<compile_context>
chip_gen: v5e
topology: v5e:2x2
jax: 0.10.0
libtpu: 0.0.40
codegen_flags: <defaults>
</compile_context>

<pallas_src>
import functools

import jax
import jax.numpy as jnp
from jax.experimental import pallas as pl
from jax.experimental.pallas import tpu as pltpu

NEG_SLOPE = 0.2
LANE = 128


def _round_up(x, m):
    return ((x + m - 1) // m) * m


def _chip_info():
    """Physical VMEM capacity (bytes) and a lowercase device-kind string."""
    vmem_cap = 128 * 1024 * 1024
    kind = ""
    try:
        vmem_cap = int(pltpu.get_tpu_info().vmem_capacity_bytes)
    except Exception:
        pass
    try:
        kind = jax.devices()[0].device_kind.lower()
    except Exception:
        pass
    return vmem_cap, kind


def discriminator_kernel(x_ref, lab_ref, *refs, num_class, bf16_act):
    """refs = (w1, ..., wL, bias_stack, loss_ref).

    x_ref:   (TB, E_pad)        bf16 activation tile
    lab_ref: (TB, 1)            int32 labels (-1 for padded rows)
    w_i:     (in_pad, out_pad)  bf16, resident in VMEM
    bias:    (R, max_out_pad)   f32, row i = bias of layer i (zero padded)
    loss:    (1, 8, 128)        f32, per-tile partial -sum(log p[label])
    """
    loss_ref = refs[-1]
    b_all = refs[-2][...]                    # (R, max_out_pad) f32
    w_refs = refs[:-2]
    n_layers = len(w_refs)

    h = x_ref[...]                           # bf16
    for i, w_ref in enumerate(w_refs):
        w = w_ref[...]                       # bf16 (in_pad_i, out_pad_i)
        out_pad = w.shape[1]
        b = b_all[i:i + 1, :out_pad]         # (1, out_pad) f32, broadcasts over rows
        z = jnp.dot(h, w, preferred_element_type=jnp.float32) + b
        if i < n_layers - 1:
            # LeakyReLU(0.2) as a single vmax (0 < slope < 1).
            # TODO(synk): nn.Dropout(p=0.3) omitted (identity / eval mode);
            # training parity would use pltpu.prng_seed + pltpu.prng_random_bits.
            if bf16_act:
                zb = z.astype(jnp.bfloat16)              # bf16 VPU path (v6e/v7x)
                h = jnp.maximum(zb, NEG_SLOPE * zb)
            else:
                h = jnp.maximum(z, NEG_SLOPE * z).astype(jnp.bfloat16)  # f32 (v5e)
        else:
            h = z                            # final logits stay f32

    # Mask padded class lanes before the (numerically stable) log_softmax.
    col = jax.lax.broadcasted_iota(jnp.int32, h.shape, 1)
    logits = jnp.where(col < num_class, h, jnp.float32(-1e30))

    m = jnp.max(logits, axis=1, keepdims=True)
    zc = logits - m
    lse = jnp.log(jnp.sum(jnp.exp(zc), axis=1, keepdims=True))
    logp = zc - lse                          # (TB, C_pad)

    # NLL partial sum for this tile; padded rows have label = -1 -> one-hot all zero.
    labels = lab_ref[...]                    # (TB, 1) int32
    onehot = (col == labels).astype(jnp.float32)
    partial = -jnp.sum(onehot * logp)
    loss_ref[...] = jnp.full(loss_ref.shape, partial, dtype=jnp.float32)


def init_params(key, embed_dim, num_class):
    """Deterministic synthetic parameters for the 7-layer MLP.

    Weights are stored as (in_dim, out_dim) so the kernel computes h @ W + b
    (equivalent to PyTorch's x @ W.T + b with W of shape (out, in))."""
    dims = [
        embed_dim,
        embed_dim * 2,
        embed_dim * 4,
        embed_dim * 2,
        embed_dim * 2,
        embed_dim,
        embed_dim // 2,
        num_class,
    ]
    params = []
    for i in range(len(dims) - 1):
        key, kw, kb = jax.random.split(key, 3)
        w = jax.random.normal(kw, (dims[i], dims[i + 1]), dtype=jnp.float32) * 0.1
        b = jax.random.normal(kb, (1, dims[i + 1]), dtype=jnp.float32) * 0.1
        params.append(w)
        params.append(b)
    return params


def discriminator_loss(embeddings, labels, params, num_class):
    """embeddings: (B, E) f32, labels: (B,) int, params: flat [w1,b1,...,w7,b7]."""
    B, E = embeddings.shape
    n_layers = len(params) // 2

    vmem_cap, kind = _chip_info()
    bf16_act = ("v5" not in kind)            # bf16 VPU activation on v6e/v7x only

    in_dims = [params[2 * i].shape[0] for i in range(n_layers)]
    out_dims = [params[2 * i].shape[1] for i in range(n_layers)]
    in_pads = [_round_up(d, LANE) for d in in_dims]
    out_pads = [_round_up(d, LANE) for d in out_dims]
    e_pad = in_pads[0]
    max_out = max(out_pads)
    n_bias_rows = max(8, _round_up(n_layers, 8))

    # Lane-dense, bf16 weights; biases stacked into one f32 (n_bias_rows, max_out).
    ws = []
    b_stack = jnp.zeros((n_bias_rows, max_out), jnp.float32)
    for i in range(n_layers):
        w = params[2 * i].astype(jnp.float32)
        b = params[2 * i + 1].reshape(-1).astype(jnp.float32)
        wp = jnp.zeros((in_pads[i], out_pads[i]), jnp.float32)
        wp = wp.at[:in_dims[i], :out_dims[i]].set(w)
        ws.append(wp.astype(jnp.bfloat16))
        b_stack = b_stack.at[i, :out_dims[i]].set(b)

    # Generation-aware batch tiling (sublane multiple of 16 for bf16 packing).
    if vmem_cap <= 64 * 1024 * 1024:         # v7x: 64 MiB per TensorCore
        tb_cap = 128
    elif "v6" in kind:                       # v6e: 128 MiB, amortize step overhead
        tb_cap = 512
    else:                                    # v5e / unknown
        tb_cap = 256
    tb = min(tb_cap, _round_up(B, 16))
    num_tiles = -(-B // tb)
    # Rebalance so the tail tile is not mostly padding (same tile count).
    tb = min(tb, _round_up(-(-B // num_tiles), 16))
    b_pad = num_tiles * tb

    # Padded input built directly in bf16 (no f32 slab materialization).
    x = jnp.zeros((b_pad, e_pad), jnp.bfloat16)
    x = x.at[:B, :E].set(embeddings.astype(jnp.bfloat16))
    lab = jnp.full((b_pad, 1), -1, jnp.int32)
    lab = lab.at[:B, 0].set(labels.astype(jnp.int32))

    kernel = functools.partial(
        discriminator_kernel, num_class=num_class, bf16_act=bf16_act)

    def _build_call(single_buffer_weights):
        def wspec(shape):
            if single_buffer_weights:
                return pl.BlockSpec(shape, lambda i: (0, 0),
                                    pipeline_mode=pl.Buffered(1))
            return pl.BlockSpec(shape, lambda i: (0, 0))

        grid_spec = pltpu.PrefetchScalarGridSpec(
            num_scalar_prefetch=0,
            grid=(num_tiles,),
            in_specs=[
                pl.BlockSpec((tb, e_pad), lambda i: (i, 0)),           # batch-tiled
                pl.BlockSpec((tb, 1), lambda i: (i, 0)),               # batch-tiled
                *[wspec(w.shape) for w in ws],                         # resident
                wspec(b_stack.shape),                                  # resident
            ],
            out_specs=pl.BlockSpec((1, 8, LANE), lambda i: (i, 0, 0)),
        )

        # Explicit VMEM budget, capped at 85% of the chip's physical VMEM.
        weight_mult = 1 if single_buffer_weights else 2
        weight_bytes = sum(int(w.size) * 2 for w in ws) + int(b_stack.size) * 4
        act_bytes = tb * max(max(in_pads), max_out) * 4 * 6
        io_bytes = 2 * (tb * e_pad * 2 + tb * 4) + 2 * (n_bias_rows * LANE * 4)
        req = weight_mult * weight_bytes + act_bytes + io_bytes
        vmem_limit = int(min(max(32 * 1024 * 1024, 2 * req),
                             int(0.85 * vmem_cap)))

        return pl.pallas_call(
            kernel,
            out_shape=jax.ShapeDtypeStruct((num_tiles, 8, LANE), jnp.float32),
            grid_spec=grid_spec,
            compiler_params=pltpu.CompilerParams(
                dimension_semantics=("parallel",),
                vmem_limit_bytes=vmem_limit,
            ),
        )

    try:
        partials = _build_call(True)(x, lab, *ws, b_stack)
    except Exception:
        # Fallback: default double-buffered resident blocks (still correct).
        partials = _build_call(False)(x, lab, *ws, b_stack)

    # Per-tile partial sums -> mean over the *true* batch size.
    return jnp.sum(partials[:, 0, 0]) / B, bf16_act


def discriminator_loss_ref_f32(embeddings, labels, params):
    """Pure-f32 JAX reference (PyTorch-equivalent numerics)."""
    h = embeddings.astype(jnp.float32)
    n_layers = len(params) // 2
    for i in range(n_layers):
        h = h @ params[2 * i] + params[2 * i + 1]
        if i < n_layers - 1:
            h = jnp.where(h >= 0, h, NEG_SLOPE * h)
    logp = jax.nn.log_softmax(h, axis=1)
    picked = jnp.take_along_axis(logp, labels.astype(jnp.int32)[:, None], axis=1)
    return -jnp.mean(picked)


def discriminator_loss_ref_mixed(embeddings, labels, params, bf16_act):
    """Reference mirroring the kernel's mixed precision (bf16 matmuls, f32 acc)."""
    h = embeddings.astype(jnp.bfloat16)
    n_layers = len(params) // 2
    for i in range(n_layers):
        w = params[2 * i].astype(jnp.bfloat16)
        b = params[2 * i + 1].astype(jnp.float32)
        z = jnp.dot(h, w, preferred_element_type=jnp.float32) + b
        if i < n_layers - 1:
            if bf16_act:
                zb = z.astype(jnp.bfloat16)
                h = jnp.maximum(zb, NEG_SLOPE * zb)
            else:
                h = jnp.maximum(z, NEG_SLOPE * z).astype(jnp.bfloat16)
        else:
            h = z
    logp = jax.nn.log_softmax(h, axis=1)
    picked = jnp.take_along_axis(logp, labels.astype(jnp.int32)[:, None], axis=1)
    return -jnp.mean(picked)


if __name__ == "__main__":
    B = 8
    EMBED_DIM = 32
    NUM_CLASS = 4

    key = jax.random.PRNGKey(0)
    k_x, k_lab, k_p = jax.random.split(key, 3)

    embeddings = jax.random.normal(k_x, (B, EMBED_DIM), dtype=jnp.float32)
    labels = jax.random.randint(k_lab, (B,), 0, NUM_CLASS, dtype=jnp.int32)
    params = init_params(k_p, EMBED_DIM, NUM_CLASS)

    loss, bf16_act = discriminator_loss(embeddings, labels, params, NUM_CLASS)
    loss = jax.block_until_ready(loss)

    ref_mixed = discriminator_loss_ref_mixed(embeddings, labels, params, bf16_act)
    ref_f32 = discriminator_loss_ref_f32(embeddings, labels, params)

    assert jnp.allclose(loss, ref_mixed, atol=2e-3, rtol=2e-3), (loss, ref_mixed)
    assert jnp.allclose(loss, ref_f32, atol=5e-2, rtol=5e-2), (loss, ref_f32)

    print("KERNEL_OK")
</pallas_src>

<mosaic_0001>
module attributes {stable_mosaic.version = 11 : i64} {
  func.func @discriminator_kernel(%arg0: i32, %arg1: memref<16x128xbf16, #tpu.memory_space<vmem>>, %arg2: memref<16x1xi32, #tpu.memory_space<vmem>>, %arg3: memref<128x128xbf16, #tpu.memory_space<vmem>>, %arg4: memref<128x128xbf16, #tpu.memory_space<vmem>>, %arg5: memref<128x128xbf16, #tpu.memory_space<vmem>>, %arg6: memref<128x128xbf16, #tpu.memory_space<vmem>>, %arg7: memref<128x128xbf16, #tpu.memory_space<vmem>>, %arg8: memref<128x128xbf16, #tpu.memory_space<vmem>>, %arg9: memref<128x128xbf16, #tpu.memory_space<vmem>>, %arg10: memref<8x128xf32, #tpu.memory_space<vmem>>, %arg11: memref<1x8x128xf32, #tpu.memory_space<vmem>>) attributes {dimension_semantics = [#tpu.dimension_semantics<parallel>], iteration_bounds = array<i64: 1>, scalar_prefetch = 0 : i64, scratch_operands = 0 : i64, tpu.core_type = #tpu.core_type<tc>, window_params = [{transform_indices = @transform_0, window_bounds = array<i64: 16, 128>}, {transform_indices = @transform_1, window_bounds = array<i64: 16, 1>}, {pipeline_mode = #tpu.pipeline_mode<synchronous>, transform_indices = @transform_2, window_bounds = array<i64: 128, 128>}, {pipeline_mode = #tpu.pipeline_mode<synchronous>, transform_indices = @transform_3, window_bounds = array<i64: 128, 128>}, {pipeline_mode = #tpu.pipeline_mode<synchronous>, transform_indices = @transform_4, window_bounds = array<i64: 128, 128>}, {pipeline_mode = #tpu.pipeline_mode<synchronous>, transform_indices = @transform_5, window_bounds = array<i64: 128, 128>}, {pipeline_mode = #tpu.pipeline_mode<synchronous>, transform_indices = @transform_6, window_bounds = array<i64: 128, 128>}, {pipeline_mode = #tpu.pipeline_mode<synchronous>, transform_indices = @transform_7, window_bounds = array<i64: 128, 128>}, {pipeline_mode = #tpu.pipeline_mode<synchronous>, transform_indices = @transform_8, window_bounds = array<i64: 128, 128>}, {pipeline_mode = #tpu.pipeline_mode<synchronous>, transform_indices = @transform_9, window_bounds = array<i64: 8, 128>}, {transform_indices = @transform_10, window_bounds = array<i64: 1, 8, 128>}]} {
    %c0 = arith.constant 0 : index
    %c0_0 = arith.constant 0 : index
    %0 = vector.load %arg10[%c0, %c0_0] : memref<8x128xf32, #tpu.memory_space<vmem>>, vector<8x128xf32>
    %c0_1 = arith.constant 0 : index
    %c0_2 = arith.constant 0 : index
    %1 = vector.load %arg1[%c0_1, %c0_2] : memref<16x128xbf16, #tpu.memory_space<vmem>>, vector<16x128xbf16>
    %c0_3 = arith.constant 0 : index
    %c0_4 = arith.constant 0 : index
    %2 = vector.load %arg3[%c0_3, %c0_4] : memref<128x128xbf16, #tpu.memory_space<vmem>>, vector<128x128xbf16>
    %3 = vector.extract_strided_slice %0 {offsets = [0, 0], sizes = [1, 128], strides = [1, 1]} : vector<8x128xf32> to vector<1x128xf32>
    %cst = arith.constant dense<0.000000e+00> : vector<16x128xf32>
    %4 = tpu.matmul %1, %2, %cst {dimension_numbers = #tpu.dot_dimension_numbers<[1], [0], [0], [1], [0, 0, 1, 1], [], []>} : vector<16x128xbf16>, vector<128x128xbf16>, vector<16x128xf32> -> vector<16x128xf32>
    %5 = vector.broadcast %3 : vector<1x128xf32> to vector<16x128xf32>
    %6 = arith.addf %4, %5 : vector<16x128xf32>
    %7 = arith.truncf %6 : vector<16x128xf32> to vector<16x128xbf16>
    %cst_5 = arith.constant 2.001950e-01 : bf16
    %8 = vector.broadcast %cst_5 : bf16 to vector<16x128xbf16>
    %9 = arith.mulf %8, %7 : vector<16x128xbf16>
    %10 = arith.maximumf %7, %9 : vector<16x128xbf16>
    %c0_6 = arith.constant 0 : index
    %c0_7 = arith.constant 0 : index
    %11 = vector.load %arg4[%c0_6, %c0_7] : memref<128x128xbf16, #tpu.memory_space<vmem>>, vector<128x128xbf16>
    %12 = vector.extract_strided_slice %0 {offsets = [1, 0], sizes = [1, 128], strides = [1, 1]} : vector<8x128xf32> to vector<1x128xf32>
    %cst_8 = arith.constant dense<0.000000e+00> : vector<16x128xf32>
    %13 = tpu.matmul %10, %11, %cst_8 {dimension_numbers = #tpu.dot_dimension_numbers<[1], [0], [0], [1], [0, 0, 1, 1], [], []>} : vector<16x128xbf16>, vector<128x128xbf16>, vector<16x128xf32> -> vector<16x128xf32>
    %14 = vector.broadcast %12 : vector<1x128xf32> to vector<16x128xf32>
    %15 = arith.addf %13, %14 : vector<16x128xf32>
    %16 = arith.truncf %15 : vector<16x128xf32> to vector<16x128xbf16>
    %cst_9 = arith.constant 2.001950e-01 : bf16
    %17 = vector.broadcast %cst_9 : bf16 to vector<16x128xbf16>
    %18 = arith.mulf %17, %16 : vector<16x128xbf16>
    %19 = arith.maximumf %16, %18 : vector<16x128xbf16>
    %c0_10 = arith.constant 0 : index
    %c0_11 = arith.constant 0 : index
    %20 = vector.load %arg5[%c0_10, %c0_11] : memref<128x128xbf16, #tpu.memory_space<vmem>>, vector<128x128xbf16>
    %21 = vector.extract_strided_slice %0 {offsets = [2, 0], sizes = [1, 128], strides = [1, 1]} : vector<8x128xf32> to vector<1x128xf32>
    %cst_12 = arith.constant dense<0.000000e+00> : vector<16x128xf32>
    %22 = tpu.matmul %19, %20, %cst_12 {dimension_numbers = #tpu.dot_dimension_numbers<[1], [0], [0], [1], [0, 0, 1, 1], [], []>} : vector<16x128xbf16>, vector<128x128xbf16>, vector<16x128xf32> -> vector<16x128xf32>
    %23 = vector.broadcast %21 : vector<1x128xf32> to vector<16x128xf32>
    %24 = arith.addf %22, %23 : vector<16x128xf32>
    %25 = arith.truncf %24 : vector<16x128xf32> to vector<16x128xbf16>
    %cst_13 = arith.constant 2.001950e-01 : bf16
    %26 = vector.broadcast %cst_13 : bf16 to vector<16x128xbf16>
    %27 = arith.mulf %26, %25 : vector<16x128xbf16>
    %28 = arith.maximumf %25, %27 : vector<16x128xbf16>
    %c0_14 = arith.constant 0 : index
    %c0_15 = arith.constant 0 : index
    %29 = vector.load %arg6[%c0_14, %c0_15] : memref<128x128xbf16, #tpu.memory_space<vmem>>, vector<128x128xbf16>
    %30 = vector.extract_strided_slice %0 {offsets = [3, 0], sizes = [1, 128], strides = [1, 1]} : vector<8x128xf32> to vector<1x128xf32>
    %cst_16 = arith.constant dense<0.000000e+00> : vector<16x128xf32>
    %31 = tpu.matmul %28, %29, %cst_16 {dimension_numbers = #tpu.dot_dimension_numbers<[1], [0], [0], [1], [0, 0, 1, 1], [], []>} : vector<16x128xbf16>, vector<128x128xbf16>, vector<16x128xf32> -> vector<16x128xf32>
    %32 = vector.broadcast %30 : vector<1x128xf32> to vector<16x128xf32>
    %33 = arith.addf %31, %32 : vector<16x128xf32>
    %34 = arith.truncf %33 : vector<16x128xf32> to vector<16x128xbf16>
    %cst_17 = arith.constant 2.001950e-01 : bf16
    %35 = vector.broadcast %cst_17 : bf16 to vector<16x128xbf16>
    %36 = arith.mulf %35, %34 : vector<16x128xbf16>
    %37 = arith.maximumf %34, %36 : vector<16x128xbf16>
    %c0_18 = arith.constant 0 : index
    %c0_19 = arith.constant 0 : index
    %38 = vector.load %arg7[%c0_18, %c0_19] : memref<128x128xbf16, #tpu.memory_space<vmem>>, vector<128x128xbf16>
    %39 = vector.extract_strided_slice %0 {offsets = [4, 0], sizes = [1, 128], strides = [1, 1]} : vector<8x128xf32> to vector<1x128xf32>
    %cst_20 = arith.constant dense<0.000000e+00> : vector<16x128xf32>
    %40 = tpu.matmul %37, %38, %cst_20 {dimension_numbers = #tpu.dot_dimension_numbers<[1], [0], [0], [1], [0, 0, 1, 1], [], []>} : vector<16x128xbf16>, vector<128x128xbf16>, vector<16x128xf32> -> vector<16x128xf32>
    %41 = vector.broadcast %39 : vector<1x128xf32> to vector<16x128xf32>
    %42 = arith.addf %40, %41 : vector<16x128xf32>
    %43 = arith.truncf %42 : vector<16x128xf32> to vector<16x128xbf16>
    %cst_21 = arith.constant 2.001950e-01 : bf16
    %44 = vector.broadcast %cst_21 : bf16 to vector<16x128xbf16>
    %45 = arith.mulf %44, %43 : vector<16x128xbf16>
    %46 = arith.maximumf %43, %45 : vector<16x128xbf16>
    %c0_22 = arith.constant 0 : index
    %c0_23 = arith.constant 0 : index
    %47 = vector.load %arg8[%c0_22, %c0_23] : memref<128x128xbf16, #tpu.memory_space<vmem>>, vector<128x128xbf16>
    %48 = vector.extract_strided_slice %0 {offsets = [5, 0], sizes = [1, 128], strides = [1, 1]} : vector<8x128xf32> to vector<1x128xf32>
    %cst_24 = arith.constant dense<0.000000e+00> : vector<16x128xf32>
    %49 = tpu.matmul %46, %47, %cst_24 {dimension_numbers = #tpu.dot_dimension_numbers<[1], [0], [0], [1], [0, 0, 1, 1], [], []>} : vector<16x128xbf16>, vector<128x128xbf16>, vector<16x128xf32> -> vector<16x128xf32>
    %50 = vector.broadcast %48 : vector<1x128xf32> to vector<16x128xf32>
    %51 = arith.addf %49, %50 : vector<16x128xf32>
    %52 = arith.truncf %51 : vector<16x128xf32> to vector<16x128xbf16>
    %cst_25 = arith.constant 2.001950e-01 : bf16
    %53 = vector.broadcast %cst_25 : bf16 to vector<16x128xbf16>
    %54 = arith.mulf %53, %52 : vector<16x128xbf16>
    %55 = arith.maximumf %52, %54 : vector<16x128xbf16>
    %c0_26 = arith.constant 0 : index
    %c0_27 = arith.constant 0 : index
    %56 = vector.load %arg9[%c0_26, %c0_27] : memref<128x128xbf16, #tpu.memory_space<vmem>>, vector<128x128xbf16>
    %57 = vector.extract_strided_slice %0 {offsets = [6, 0], sizes = [1, 128], strides = [1, 1]} : vector<8x128xf32> to vector<1x128xf32>
    %cst_28 = arith.constant dense<0.000000e+00> : vector<16x128xf32>
    %58 = tpu.matmul %55, %56, %cst_28 {dimension_numbers = #tpu.dot_dimension_numbers<[1], [0], [0], [1], [0, 0, 1, 1], [], []>} : vector<16x128xbf16>, vector<128x128xbf16>, vector<16x128xf32> -> vector<16x128xf32>
    %59 = vector.broadcast %57 : vector<1x128xf32> to vector<16x128xf32>
    %60 = arith.addf %58, %59 : vector<16x128xf32>
    %61 = tpu.iota {dimensions = array<i32: 1>} : vector<16x128xi32>
    %c4_i32 = arith.constant 4 : i32
    %62 = vector.broadcast %c4_i32 : i32 to vector<16x128xi32>
    %63 = arith.cmpi slt, %61, %62 : vector<16x128xi32>
    %cst_29 = arith.constant -1.000000e+30 : f32
    %64 = vector.broadcast %cst_29 : f32 to vector<16x128xf32>
    %65 = arith.select %63, %60, %64 : vector<16x128xi1>, vector<16x128xf32>
    %cst_30 = arith.constant dense<0xFF800000> : vector<16xf32>
    %66 = vector.multi_reduction <maximumf>, %65, %cst_30 [1] : vector<16x128xf32> to vector<16xf32>
    %67 = vector.shape_cast %66 : vector<16xf32> to vector<16x1xf32>
    %68 = vector.broadcast %67 : vector<16x1xf32> to vector<16x128xf32>
    %69 = arith.subf %65, %68 : vector<16x128xf32>
    %70 = math.exp %69 : vector<16x128xf32>
    %cst_31 = arith.constant dense<0.000000e+00> : vector<16xf32>
    %71 = vector.multi_reduction <add>, %70, %cst_31 [1] : vector<16x128xf32> to vector<16xf32>
    %72 = vector.shape_cast %71 : vector<16xf32> to vector<16x1xf32>
    %73 = math.log %72 : vector<16x1xf32>
    %74 = vector.broadcast %73 : vector<16x1xf32> to vector<16x128xf32>
    %75 = arith.subf %69, %74 : vector<16x128xf32>
    %c0_32 = arith.constant 0 : index
    %c0_33 = arith.constant 0 : index
    %76 = vector.load %arg2[%c0_32, %c0_33] : memref<16x1xi32, #tpu.memory_space<vmem>>, vector<16x1xi32>
    %77 = vector.broadcast %76 : vector<16x1xi32> to vector<16x128xi32>
    %78 = arith.cmpi eq, %61, %77 : vector<16x128xi32>
    %79 = arith.extui %78 : vector<16x128xi1> to vector<16x128xi32>
    %80 = arith.sitofp %79 : vector<16x128xi32> to vector<16x128xf32>
    %81 = arith.mulf %80, %75 : vector<16x128xf32>
    %82 = vector.shape_cast %81 : vector<16x128xf32> to vector<1x16x128xf32>
    %cst_34 = arith.constant dense<0.000000e+00> : vector<1xf32>
    %83 = vector.multi_reduction <add>, %82, %cst_34 [1, 2] : vector<1x16x128xf32> to vector<1xf32>
    %84 = vector.shape_cast %83 : vector<1xf32> to vector<1x1x1xf32>
    %85 = vector.extract %84[0, 0, 0] : f32 from vector<1x1x1xf32>
    %cst_35 = arith.constant 0.000000e+00 : f32
    %86 = arith.subf %cst_35, %85 : f32
    %87 = vector.broadcast %86 : f32 to vector<1x8x128xf32>
    %c0_36 = arith.constant 0 : index
    %c0_37 = arith.constant 0 : index
    %c0_38 = arith.constant 0 : index
    %88 = vector.load %arg11[%c0_36, %c0_37, %c0_38] : memref<1x8x128xf32, #tpu.memory_space<vmem>>, vector<1x8x128xf32>
    tpu.vector_store %arg11[%c0_36, %c0_37, %c0_38], %87 {strides = array<i32>} : memref<1x8x128xf32, #tpu.memory_space<vmem>>, vector<1x8x128xf32>,
    return
  }
  func.func @transform_0(%arg0: i32) -> (i32, i32) {
    %c0_i32 = arith.constant 0 : i32
    %c0_i32_0 = arith.constant 0 : i32
    return %arg0, %c0_i32 : i32, i32
  }
  func.func @transform_1(%arg0: i32) -> (i32, i32) {
    %c0_i32 = arith.constant 0 : i32
    %c0_i32_0 = arith.constant 0 : i32
    return %arg0, %c0_i32 : i32, i32
  }
  func.func @transform_2(%arg0: i32) -> (i32, i32) {
    %c0_i32 = arith.constant 0 : i32
    %c0_i32_0 = arith.constant 0 : i32
    %c0_i32_1 = arith.constant 0 : i32
    return %c0_i32, %c0_i32_0 : i32, i32
  }
  func.func @transform_3(%arg0: i32) -> (i32, i32) {
    %c0_i32 = arith.constant 0 : i32
    %c0_i32_0 = arith.constant 0 : i32
    %c0_i32_1 = arith.constant 0 : i32
    return %c0_i32, %c0_i32_0 : i32, i32
  }
  func.func @transform_4(%arg0: i32) -> (i32, i32) {
    %c0_i32 = arith.constant 0 : i32
    %c0_i32_0 = arith.constant 0 : i32
    %c0_i32_1 = arith.constant 0 : i32
    return %c0_i32, %c0_i32_0 : i32, i32
  }
  func.func @transform_5(%arg0: i32) -> (i32, i32) {
    %c0_i32 = arith.constant 0 : i32
    %c0_i32_0 = arith.constant 0 : i32
    %c0_i32_1 = arith.constant 0 : i32
    return %c0_i32, %c0_i32_0 : i32, i32
  }
  func.func @transform_6(%arg0: i32) -> (i32, i32) {
    %c0_i32 = arith.constant 0 : i32
    %c0_i32_0 = arith.constant 0 : i32
    %c0_i32_1 = arith.constant 0 : i32
    return %c0_i32, %c0_i32_0 : i32, i32
  }
  func.func @transform_7(%arg0: i32) -> (i32, i32) {
    %c0_i32 = arith.constant 0 : i32
    %c0_i32_0 = arith.constant 0 : i32
    %c0_i32_1 = arith.constant 0 : i32
    return %c0_i32, %c0_i32_0 : i32, i32
  }
  func.func @transform_8(%arg0: i32) -> (i32, i32) {
    %c0_i32 = arith.constant 0 : i32
    %c0_i32_0 = arith.constant 0 : i32
    %c0_i32_1 = arith.constant 0 : i32
    return %c0_i32, %c0_i32_0 : i32, i32
  }
  func.func @transform_9(%arg0: i32) -> (i32, i32) {
    %c0_i32 = arith.constant 0 : i32
    %c0_i32_0 = arith.constant 0 : i32
    %c0_i32_1 = arith.constant 0 : i32
    return %c0_i32, %c0_i32_0 : i32, i32
  }
  func.func @transform_10(%arg0: i32) -> (i32, i32, i32) {
    %c0_i32 = arith.constant 0 : i32
    %c0_i32_0 = arith.constant 0 : i32
    %c0_i32_1 = arith.constant 0 : i32
    return %arg0, %c0_i32, %c0_i32_0 : i32, i32, i32
  }
}

module attributes {stable_mosaic.version = 11 : i64} {
  func.func @discriminator_kernel(%arg0: i32, %arg1: memref<16x128xbf16, #tpu.memory_space<vmem>>, %arg2: memref<16x1xi32, #tpu.memory_space<vmem>>, %arg3: memref<128x128xbf16, #tpu.memory_space<vmem>>, %arg4: memref<128x128xbf16, #tpu.memory_space<vmem>>, %arg5: memref<128x128xbf16, #tpu.memory_space<vmem>>, %arg6: memref<128x128xbf16, #tpu.memory_space<vmem>>, %arg7: memref<128x128xbf16, #tpu.memory_space<vmem>>, %arg8: memref<128x128xbf16, #tpu.memory_space<vmem>>, %arg9: memref<128x128xbf16, #tpu.memory_space<vmem>>, %arg10: memref<8x128xf32, #tpu.memory_space<vmem>>, %arg11: memref<1x8x128xf32, #tpu.memory_space<vmem>>) attributes {dimension_semantics = [#tpu.dimension_semantics<parallel>], iteration_bounds = array<i64: 1>, scalar_prefetch = 0 : i64, scratch_operands = 0 : i64, tpu.core_type = #tpu.core_type<tc>, window_params = [{transform_indices = @transform_0, window_bounds = array<i64: 16, 128>}, {transform_indices = @transform_1, window_bounds = array<i64: 16, 1>}, {pipeline_mode = #tpu.pipeline_mode<synchronous>, transform_indices = @transform_2, window_bounds = array<i64: 128, 128>}, {pipeline_mode = #tpu.pipeline_mode<synchronous>, transform_indices = @transform_3, window_bounds = array<i64: 128, 128>}, {pipeline_mode = #tpu.pipeline_mode<synchronous>, transform_indices = @transform_4, window_bounds = array<i64: 128, 128>}, {pipeline_mode = #tpu.pipeline_mode<synchronous>, transform_indices = @transform_5, window_bounds = array<i64: 128, 128>}, {pipeline_mode = #tpu.pipeline_mode<synchronous>, transform_indices = @transform_6, window_bounds = array<i64: 128, 128>}, {pipeline_mode = #tpu.pipeline_mode<synchronous>, transform_indices = @transform_7, window_bounds = array<i64: 128, 128>}, {pipeline_mode = #tpu.pipeline_mode<synchronous>, transform_indices = @transform_8, window_bounds = array<i64: 128, 128>}, {pipeline_mode = #tpu.pipeline_mode<synchronous>, transform_indices = @transform_9, window_bounds = array<i64: 8, 128>}, {transform_indices = @transform_10, window_bounds = array<i64: 1, 8, 128>}]} {
    %c0 = arith.constant 0 : index
    %c0_0 = arith.constant 0 : index
    %0 = vector.load %arg10[%c0, %c0_0] : memref<8x128xf32, #tpu.memory_space<vmem>>, vector<8x128xf32>
    %c0_1 = arith.constant 0 : index
    %c0_2 = arith.constant 0 : index
    %1 = vector.load %arg1[%c0_1, %c0_2] : memref<16x128xbf16, #tpu.memory_space<vmem>>, vector<16x128xbf16>
    %c0_3 = arith.constant 0 : index
    %c0_4 = arith.constant 0 : index
    %2 = vector.load %arg3[%c0_3, %c0_4] : memref<128x128xbf16, #tpu.memory_space<vmem>>, vector<128x128xbf16>
    %3 = vector.extract_strided_slice %0 {offsets = [0, 0], sizes = [1, 128], strides = [1, 1]} : vector<8x128xf32> to vector<1x128xf32>
    %cst = arith.constant dense<0.000000e+00> : vector<16x128xf32>
    %4 = tpu.matmul %1, %2, %cst {dimension_numbers = #tpu.dot_dimension_numbers<[1], [0], [0], [1], [0, 0, 1, 1], [], []>} : vector<16x128xbf16>, vector<128x128xbf16>, vector<16x128xf32> -> vector<16x128xf32>
    %5 = vector.broadcast %3 : vector<1x128xf32> to vector<16x128xf32>
    %6 = arith.addf %4, %5 : vector<16x128xf32>
    %7 = arith.truncf %6 : vector<16x128xf32> to vector<16x128xbf16>
    %cst_5 = arith.constant 2.001950e-01 : bf16
    %8 = vector.broadcast %cst_5 : bf16 to vector<16x128xbf16>
    %9 = arith.mulf %8, %7 : vector<16x128xbf16>
    %10 = arith.maximumf %7, %9 : vector<16x128xbf16>
    %c0_6 = arith.constant 0 : index
    %c0_7 = arith.constant 0 : index
    %11 = vector.load %arg4[%c0_6, %c0_7] : memref<128x128xbf16, #tpu.memory_space<vmem>>, vector<128x128xbf16>
    %12 = vector.extract_strided_slice %0 {offsets = [1, 0], sizes = [1, 128], strides = [1, 1]} : vector<8x128xf32> to vector<1x128xf32>
    %cst_8 = arith.constant dense<0.000000e+00> : vector<16x128xf32>
    %13 = tpu.matmul %10, %11, %cst_8 {dimension_numbers = #tpu.dot_dimension_numbers<[1], [0], [0], [1], [0, 0, 1, 1], [], []>} : vector<16x128xbf16>, vector<128x128xbf16>, vector<16x128xf32> -> vector<16x128xf32>
    %14 = vector.broadcast %12 : vector<1x128xf32> to vector<16x128xf32>
    %15 = arith.addf %13, %14 : vector<16x128xf32>
    %16 = arith.truncf %15 : vector<16x128xf32> to vector<16x128xbf16>
    %cst_9 = arith.constant 2.001950e-01 : bf16
    %17 = vector.broadcast %cst_9 : bf16 to vector<16x128xbf16>
    %18 = arith.mulf %17, %16 : vector<16x128xbf16>
    %19 = arith.maximumf %16, %18 : vector<16x128xbf16>
    %c0_10 = arith.constant 0 : index
    %c0_11 = arith.constant 0 : index
    %20 = vector.load %arg5[%c0_10, %c0_11] : memref<128x128xbf16, #tpu.memory_space<vmem>>, vector<128x128xbf16>
    %21 = vector.extract_strided_slice %0 {offsets = [2, 0], sizes = [1, 128], strides = [1, 1]} : vector<8x128xf32> to vector<1x128xf32>
    %cst_12 = arith.constant dense<0.000000e+00> : vector<16x128xf32>
    %22 = tpu.matmul %19, %20, %cst_12 {dimension_numbers = #tpu.dot_dimension_numbers<[1], [0], [0], [1], [0, 0, 1, 1], [], []>} : vector<16x128xbf16>, vector<128x128xbf16>, vector<16x128xf32> -> vector<16x128xf32>
    %23 = vector.broadcast %21 : vector<1x128xf32> to vector<16x128xf32>
    %24 = arith.addf %22, %23 : vector<16x128xf32>
    %25 = arith.truncf %24 : vector<16x128xf32> to vector<16x128xbf16>
    %cst_13 = arith.constant 2.001950e-01 : bf16
    %26 = vector.broadcast %cst_13 : bf16 to vector<16x128xbf16>
    %27 = arith.mulf %26, %25 : vector<16x128xbf16>
    %28 = arith.maximumf %25, %27 : vector<16x128xbf16>
    %c0_14 = arith.constant 0 : index
    %c0_15 = arith.constant 0 : index
    %29 = vector.load %arg6[%c0_14, %c0_15] : memref<128x128xbf16, #tpu.memory_space<vmem>>, vector<128x128xbf16>
    %30 = vector.extract_strided_slice %0 {offsets = [3, 0], sizes = [1, 128], strides = [1, 1]} : vector<8x128xf32> to vector<1x128xf32>
    %cst_16 = arith.constant dense<0.000000e+00> : vector<16x128xf32>
    %31 = tpu.matmul %28, %29, %cst_16 {dimension_numbers = #tpu.dot_dimension_numbers<[1], [0], [0], [1], [0, 0, 1, 1], [], []>} : vector<16x128xbf16>, vector<128x128xbf16>, vector<16x128xf32> -> vector<16x128xf32>
    %32 = vector.broadcast %30 : vector<1x128xf32> to vector<16x128xf32>
    %33 = arith.addf %31, %32 : vector<16x128xf32>
    %34 = arith.truncf %33 : vector<16x128xf32> to vector<16x128xbf16>
    %cst_17 = arith.constant 2.001950e-01 : bf16
    %35 = vector.broadcast %cst_17 : bf16 to vector<16x128xbf16>
    %36 = arith.mulf %35, %34 : vector<16x128xbf16>
    %37 = arith.maximumf %34, %36 : vector<16x128xbf16>
    %c0_18 = arith.constant 0 : index
    %c0_19 = arith.constant 0 : index
    %38 = vector.load %arg7[%c0_18, %c0_19] : memref<128x128xbf16, #tpu.memory_space<vmem>>, vector<128x128xbf16>
    %39 = vector.extract_strided_slice %0 {offsets = [4, 0], sizes = [1, 128], strides = [1, 1]} : vector<8x128xf32> to vector<1x128xf32>
    %cst_20 = arith.constant dense<0.000000e+00> : vector<16x128xf32>
    %40 = tpu.matmul %37, %38, %cst_20 {dimension_numbers = #tpu.dot_dimension_numbers<[1], [0], [0], [1], [0, 0, 1, 1], [], []>} : vector<16x128xbf16>, vector<128x128xbf16>, vector<16x128xf32> -> vector<16x128xf32>
    %41 = vector.broadcast %39 : vector<1x128xf32> to vector<16x128xf32>
    %42 = arith.addf %40, %41 : vector<16x128xf32>
    %43 = arith.truncf %42 : vector<16x128xf32> to vector<16x128xbf16>
    %cst_21 = arith.constant 2.001950e-01 : bf16
    %44 = vector.broadcast %cst_21 : bf16 to vector<16x128xbf16>
    %45 = arith.mulf %44, %43 : vector<16x128xbf16>
    %46 = arith.maximumf %43, %45 : vector<16x128xbf16>
    %c0_22 = arith.constant 0 : index
    %c0_23 = arith.constant 0 : index
    %47 = vector.load %arg8[%c0_22, %c0_23] : memref<128x128xbf16, #tpu.memory_space<vmem>>, vector<128x128xbf16>
    %48 = vector.extract_strided_slice %0 {offsets = [5, 0], sizes = [1, 128], strides = [1, 1]} : vector<8x128xf32> to vector<1x128xf32>
    %cst_24 = arith.constant dense<0.000000e+00> : vector<16x128xf32>
    %49 = tpu.matmul %46, %47, %cst_24 {dimension_numbers = #tpu.dot_dimension_numbers<[1], [0], [0], [1], [0, 0, 1, 1], [], []>} : vector<16x128xbf16>, vector<128x128xbf16>, vector<16x128xf32> -> vector<16x128xf32>
    %50 = vector.broadcast %48 : vector<1x128xf32> to vector<16x128xf32>
    %51 = arith.addf %49, %50 : vector<16x128xf32>
    %52 = arith.truncf %51 : vector<16x128xf32> to vector<16x128xbf16>
    %cst_25 = arith.constant 2.001950e-01 : bf16
    %53 = vector.broadcast %cst_25 : bf16 to vector<16x128xbf16>
    %54 = arith.mulf %53, %52 : vector<16x128xbf16>
    %55 = arith.maximumf %52, %54 : vector<16x128xbf16>
    %c0_26 = arith.constant 0 : index
    %c0_27 = arith.constant 0 : index
    %56 = vector.load %arg9[%c0_26, %c0_27] : memref<128x128xbf16, #tpu.memory_space<vmem>>, vector<128x128xbf16>
    %57 = vector.extract_strided_slice %0 {offsets = [6, 0], sizes = [1, 128], strides = [1, 1]} : vector<8x128xf32> to vector<1x128xf32>
    %cst_28 = arith.constant dense<0.000000e+00> : vector<16x128xf32>
    %58 = tpu.matmul %55, %56, %cst_28 {dimension_numbers = #tpu.dot_dimension_numbers<[1], [0], [0], [1], [0, 0, 1, 1], [], []>} : vector<16x128xbf16>, vector<128x128xbf16>, vector<16x128xf32> -> vector<16x128xf32>
    %59 = vector.broadcast %57 : vector<1x128xf32> to vector<16x128xf32>
    %60 = arith.addf %58, %59 : vector<16x128xf32>
    %61 = tpu.iota {dimensions = array<i32: 1>} : vector<16x128xi32>
    %c4_i32 = arith.constant 4 : i32
    %62 = vector.broadcast %c4_i32 : i32 to vector<16x128xi32>
    %63 = arith.cmpi slt, %61, %62 : vector<16x128xi32>
    %cst_29 = arith.constant -1.000000e+30 : f32
    %64 = vector.broadcast %cst_29 : f32 to vector<16x128xf32>
    %65 = arith.select %63, %60, %64 : vector<16x128xi1>, vector<16x128xf32>
    %cst_30 = arith.constant dense<0xFF800000> : vector<16xf32>
    %66 = vector.multi_reduction <maximumf>, %65, %cst_30 [1] : vector<16x128xf32> to vector<16xf32>
    %67 = vector.shape_cast %66 : vector<16xf32> to vector<16x1xf32>
    %68 = vector.broadcast %67 : vector<16x1xf32> to vector<16x128xf32>
    %69 = arith.subf %65, %68 : vector<16x128xf32>
    %70 = math.exp %69 : vector<16x128xf32>
    %cst_31 = arith.constant dense<0.000000e+00> : vector<16xf32>
    %71 = vector.multi_reduction <add>, %70, %cst_31 [1] : vector<16x128xf32> to vector<16xf32>
    %72 = vector.shape_cast %71 : vector<16xf32> to vector<16x1xf32>
    %73 = math.log %72 : vector<16x1xf32>
    %74 = vector.broadcast %73 : vector<16x1xf32> to vector<16x128xf32>
    %75 = arith.subf %69, %74 : vector<16x128xf32>
    %c0_32 = arith.constant 0 : index
    %c0_33 = arith.constant 0 : index
    %76 = vector.load %arg2[%c0_32, %c0_33] : memref<16x1xi32, #tpu.memory_space<vmem>>, vector<16x1xi32>
    %77 = vector.broadcast %76 : vector<16x1xi32> to vector<16x128xi32>
    %78 = arith.cmpi eq, %61, %77 : vector<16x128xi32>
    %79 = arith.extui %78 : vector<16x128xi1> to vector<16x128xi32>
    %80 = arith.sitofp %79 : vector<16x128xi32> to vector<16x128xf32>
    %81 = arith.mulf %80, %75 : vector<16x128xf32>
    %82 = vector.shape_cast %81 : vector<16x128xf32> to vector<1x16x128xf32>
    %cst_34 = arith.constant dense<0.000000e+00> : vector<1xf32>
    %83 = vector.multi_reduction <add>, %82, %cst_34 [1, 2] : vector<1x16x128xf32> to vector<1xf32>
    %84 = vector.shape_cast %83 : vector<1xf32> to vector<1x1x1xf32>
    %85 = vector.extract %84[0, 0, 0] : f32 from vector<1x1x1xf32>
    %cst_35 = arith.constant 0.000000e+00 : f32
    %86 = arith.subf %cst_35, %85 : f32
    %87 = vector.broadcast %86 : f32 to vector<1x8x128xf32>
    %c0_36 = arith.constant 0 : index
    %c0_37 = arith.constant 0 : index
    %c0_38 = arith.constant 0 : index
    %88 = vector.load %arg11[%c0_36, %c0_37, %c0_38] : memref<1x8x128xf32, #tpu.memory_space<vmem>>, vector<1x8x128xf32>
    tpu.vector_store %arg11[%c0_36, %c0_37, %c0_38], %87 {strides = array<i32>} : memref<1x8x128xf32, #tpu.memory_space<vmem>>, vector<1x8x128xf32>,
    return
  }
  func.func @transform_0(%arg0: i32) -> (i32, i32) {
    %c0_i32 = arith.constant 0 : i32
    %c0_i32_0 = arith.constant 0 : i32
    return %arg0, %c0_i32 : i32, i32
  }
  func.func @transform_1(%arg0: i32) -> (i32, i32) {
    %c0_i32 = arith.constant 0 : i32
    %c0_i32_0 = arith.constant 0 : i32
    return %arg0, %c0_i32 : i32, i32
  }
  func.func @transform_2(%arg0: i32) -> (i32, i32) {
    %c0_i32 = arith.constant 0 : i32
    %c0_i32_0 = arith.constant 0 : i32
    %c0_i32_1 = arith.constant 0 : i32
    return %c0_i32, %c0_i32_0 : i32, i32
  }
  func.func @transform_3(%arg0: i32) -> (i32, i32) {
    %c0_i32 = arith.constant 0 : i32
    %c0_i32_0 = arith.constant 0 : i32
    %c0_i32_1 = arith.constant 0 : i32
    return %c0_i32, %c0_i32_0 : i32, i32
  }
  func.func @transform_4(%arg0: i32) -> (i32, i32) {
    %c0_i32 = arith.constant 0 : i32
    %c0_i32_0 = arith.constant 0 : i32
    %c0_i32_1 = arith.constant 0 : i32
    return %c0_i32, %c0_i32_0 : i32, i32
  }
  func.func @transform_5(%arg0: i32) -> (i32, i32) {
    %c0_i32 = arith.constant 0 : i32
    %c0_i32_0 = arith.constant 0 : i32
    %c0_i32_1 = arith.constant 0 : i32
    return %c0_i32, %c0_i32_0 : i32, i32
  }
  func.func @transform_6(%arg0: i32) -> (i32, i32) {
    %c0_i32 = arith.constant 0 : i32
    %c0_i32_0 = arith.constant 0 : i32
    %c0_i32_1 = arith.constant 0 : i32
    return %c0_i32, %c0_i32_0 : i32, i32
  }
  func.func @transform_7(%arg0: i32) -> (i32, i32) {
    %c0_i32 = arith.constant 0 : i32
    %c0_i32_0 = arith.constant 0 : i32
    %c0_i32_1 = arith.constant 0 : i32
    return %c0_i32, %c0_i32_0 : i32, i32
  }
  func.func @transform_8(%arg0: i32) -> (i32, i32) {
    %c0_i32 = arith.constant 0 : i32
    %c0_i32_0 = arith.constant 0 : i32
    %c0_i32_1 = arith.constant 0 : i32
    return %c0_i32, %c0_i32_0 : i32, i32
  }
  func.func @transform_9(%arg0: i32) -> (i32, i32) {
    %c0_i32 = arith.constant 0 : i32
    %c0_i32_0 = arith.constant 0 : i32
    %c0_i32_1 = arith.constant 0 : i32
    return %c0_i32, %c0_i32_0 : i32, i32
  }
  func.func @transform_10(%arg0: i32) -> (i32, i32, i32) {
    %c0_i32 = arith.constant 0 : i32
    %c0_i32_0 = arith.constant 0 : i32
    %c0_i32_1 = arith.constant 0 : i32
    return %arg0, %c0_i32, %c0_i32_0 : i32, i32, i32
  }
}

</mosaic_0001>

<bundles_post_ra>
// kernel: tpu_custom_call.1
= control target key start
LH: loop header
LB: loop body
LE: loop exit
PB: predicated region body
PF: predicated region fallthrough
CT: control target
= control target key end

     0   :  { %15 = vsyncpa [#allocation3], 0  ;;  %s1505_s0 = inlined_call_operand.vmem [shape: bf16[16,128], index: 0, kind: input, shape index: {}]   ;;  %s1506_s1 = inlined_call_operand.vmem [shape: s32[16,1], index: 1, kind: input, shape index: {}]   ;;  %s1507_s2 = inlined_call_operand.hbm [shape: bf16[128,128], index: 2, kind: input, shape index: {}]   ;;  %s1508_s3 = inlined_call_operand.hbm [shape: bf16[128,128], index: 3, kind: input, shape index: {}]   ;;  %s1509_s4 = inlined_call_operand.hbm [shape: bf16[128,128], index: 4, kind: input, shape index: {}]   ;;  %s1510_s5 = inlined_call_operand.hbm [shape: bf16[128,128], index: 5, kind: input, shape index: {}]   ;;  %s1511_s6 = inlined_call_operand.hbm [shape: bf16[128,128], index: 6, kind: input, shape index: {}]   ;;  %s1512_s7 = inlined_call_operand.hbm [shape: bf16[128,128], index: 7, kind: input, shape index: {}]   ;;  %s1513_s8 = inlined_call_operand.hbm [shape: bf16[128,128], index: 8, kind: input, shape index: {}]   ;;  %s1514_s9 = inlined_call_operand.vmem [shape: f32[8,128], index: 9, kind: input, shape index: {}]   ;;  %s1515_s10 = inlined_call_operand.hbm [shape: f32[1,8,128], index: 10, kind: output, shape index: {}]  }
   0x1   :  { %16 = vsyncpa [#allocation6], 0 }
   0x2   :  { %17 = vsyncpa [#allocation9], 0 }
   0x3   :  { %18 = vsyncpa [#allocation12], 0 }
   0x4   :  { %19 = vsyncpa [#allocation4], 0  ;;  %s41_s15 = sshll.u32 %s1508_s3, 4  ;;  %s1372_s16 = smov [#allocation5]   ;;  %s42_s15 = int_to_ptr.hbm [resolvable:$true] %s41_s15 }
   0x5   :  { %s43_s17 = sshll.u32 %s1372_s16, 4  ;;  %s67_s20 = sshll.u32 %s1510_s5, 4  ;;  %s44_s17 = int_to_ptr.vmem [resolvable:$true] %s43_s17  ;;  %s68_s20 = int_to_ptr.hbm [resolvable:$true] %s67_s20 }
   0x6   :  { %s1373_s21 = smov 64   ;;  %s1374_s22 = smov 4  }
   0x7   :  { %49 = dma.hbm_to_vmem [thread:$0]  %s42_s15, 1024, %s44_s17, [#allocation6], %s1373_s21, %s1373_s21, %s1374_s22  }
   0x8   :  { %s1375_s23 = smov [#allocation8]   ;;  %s93_s3 = sshll.u32 %s1512_s7, 4  ;;  %s94_s3 = int_to_ptr.hbm [resolvable:$true] %s93_s3 }
   0x9   :  { %s69_s24 = sshll.u32 %s1375_s23, 4  ;;  %s28_s28 = sshll.u32 %s1507_s2, 4  ;;  %s70_s24 = int_to_ptr.vmem [resolvable:$true] %s69_s24  ;;  %s29_s28 = int_to_ptr.hbm [resolvable:$true] %s28_s28 }
   0xa   :  { %75 = dma.hbm_to_vmem [thread:$0]  %s68_s20, 1024, %s70_s24, [#allocation9], %s1373_s21, %s1373_s21, %s1374_s22  }
   0xb   :  { %s1376_s29 = smov [#allocation11]   ;;  %s1377_s11 = smov [#allocation2]  }
   0xc   :  { %s95_s30 = sshll.u32 %s1376_s29, 4  ;;  %s30_s7 = sshll.u32 %s1377_s11, 4  ;;  %s96_s30 = int_to_ptr.vmem [resolvable:$true] %s95_s30  ;;  %s31_s7 = int_to_ptr.vmem [resolvable:$true] %s30_s7 }
   0xd   :  { %101 = dma.hbm_to_vmem [thread:$0]  %s94_s3, 1024, %s96_s30, [#allocation12], %s1373_s21, %s1373_s21, %s1374_s22  }
   0xe   :  { %s54_s14 = sshll.u32 %s1509_s4, 4  ;;  %s80_s16 = sshll.u32 %s1511_s6, 4  ;;  %s55_s14 = int_to_ptr.hbm [resolvable:$true] %s54_s14  ;;  %s81_s16 = int_to_ptr.hbm [resolvable:$true] %s80_s16 }
   0xf   :  { %36 = dma.hbm_to_vmem [thread:$0]  %s29_s28, 1024, %s31_s7, [#allocation3], %s1373_s21, %s1373_s21, %s1374_s22  }
  0x10   :  { %s1378_s17 = smov [#allocation7]   ;;  %s1379_s19 = smov [#allocation10]  }
  0x11   :  { %s56_s18 = sshll.u32 %s1378_s17, 4  ;;  %s82_s4 = sshll.u32 %s1379_s19, 4  ;;  %s57_s18 = int_to_ptr.vmem [resolvable:$true] %s56_s18  ;;  %s83_s4 = int_to_ptr.vmem [resolvable:$true] %s82_s4 }
  0x12   :  { %62 = dma.hbm_to_vmem [thread:$0]  %s55_s14, 1024, %s57_s18, [#allocation6], %s1373_s21, %s1373_s21, %s1374_s22  }
  0x13   :  { %s106_s24 = sshll.u32 %s1513_s8, 4  ;;  %s1380_s6 = smov [#allocation13]   ;;  %s107_s24 = int_to_ptr.hbm [resolvable:$true] %s106_s24 }
  0x14   :  { %88 = dma.hbm_to_vmem [thread:$0]  %s81_s16, 1024, %s83_s4, [#allocation9], %s1373_s21, %s1373_s21, %s1374_s22  }
  0x15   :  { %s108_s25 = sshll.u32 %s1380_s6, 4  ;;  %s109_s25 = int_to_ptr.vmem [resolvable:$true] %s108_s25 }
  0x16   :  { %114 = dma.hbm_to_vmem [thread:$0]  %s107_s24, 1024, %s109_s25, [#allocation12], %s1373_s21, %s1373_s21, %s1374_s22  }
  0x17   :  { %1362 = dma.done.wait [#allocation3], 1024  }
  0x18   :  { %1363 = vsyncadd [#allocation3], 4294966272 }
  0x19   :  { %1364 = dma.done.wait [#allocation6], 2048  }
  0x1a   :  { %1365 = vsyncadd [#allocation6], 4294965248 }
  0x1b   :  { %1366 = dma.done.wait [#allocation9], 2048  }
  0x1c   :  { %1367 = vsyncadd [#allocation9], 4294965248 }
  0x1d   :  { %1368 = dma.done.wait [#allocation12], 2048  }
  0x1e   :  { %1369 = vsyncadd [#allocation12], 4294965248  ;;  %v1097_v0 = vld [vmem:[#allocation2 + $0x38] sm:$0xff]  ;;  %v1096_v1 = vld [vmem:[#allocation2 + $0x30] sm:$0xff]  ;;  %s846_s30 = sshll.u32 %s1515_s10, 4  ;;  %s847_s30 = int_to_ptr.hbm [resolvable:$true] %s846_s30 }
  0x1f   :  { %219 = vmatpush.bf16.msra.mxu0 %v1097_v0  ;;  %v1105_v2 = vld [vmem:[#allocation5 + $0x38] sm:$0xff]  ;;  %v1104_v3 = vld [vmem:[#allocation5 + $0x30] sm:$0xff]  ;;  %v1095_v4 = vld [vmem:[#allocation2 + $0x28] sm:$0xff] }
  0x20   :  { %311 = vmatpush.bf16.msra.mxu1 %v1105_v2  ;;  %v1103_v5 = vld [vmem:[#allocation5 + $0x28] sm:$0xff]  ;;  %v1094_v6 = vld [vmem:[#allocation2 + $0x20] sm:$0xff]  ;;  %v1093_v7 = vld [vmem:[#allocation2 + $0x18] sm:$0xff] }
  0x21   :  { %v1092_v8 = vld [vmem:[#allocation2 + $0x10] sm:$0xff]  ;;  %v1091_v9 = vld [vmem:[#allocation2 + $0x8] sm:$0xff]  ;;  %v1090_v10 = vld [vmem:[#allocation2] sm:$0xff] }
  0x22   :  { %v1089_v11 = vld [vmem:[%s1505_s0] sm:$0xff]  ;;  %v1101_v13 = vld [vmem:[#allocation5 + $0x18] sm:$0xff]  ;;  %v1100_v14 = vld [vmem:[#allocation5 + $0x10] sm:$0xff] }
  0x23   :  { %220 = vmatpush.bf16.msra.mxu0 %v1096_v1  ;;  %v1102_v12 = vld [vmem:[#allocation5 + $0x20] sm:$0xff]  ;;  %v1099_v15 = vld [vmem:[#allocation5 + $0x8] sm:$0xff]  ;;  %v1113_v17 = vld [vmem:[#allocation7 + $0x38] sm:$0xff] }
  0x24   :  { %312 = vmatpush.bf16.msra.mxu1 %v1104_v3  ;;  %v1098_v16 = vld [vmem:[#allocation5] sm:$0xff]  ;;  %403 = vmatpush.bf16.msra.mxu2 %v1113_v17  ;;  %v1112_v18 = vld [vmem:[#allocation7 + $0x30] sm:$0xff]  ;;  %v1111_v20 = vld [vmem:[#allocation7 + $0x28] sm:$0xff] }
  0x25   :  { %v1487_v19 = vld [vmem:[%s1514_s9] sm:$0xff]  ;;  %v1109_v36 = vld [vmem:[#allocation7 + $0x18] sm:$0xff]  ;;  %v1108_v37 = vld [vmem:[#allocation7 + $0x10] sm:$0xff] }
  0x26   :  { %v164_v21 = vperm.slane %v1487_v19, 0  ;;  %v1110_v35 = vld [vmem:[#allocation7 + $0x20] sm:$0xff]  ;;  %v1107_v38 = vld [vmem:[#allocation7 + $0x8] sm:$0xff]  ;;  %v1121_v40 = vld [vmem:[#allocation8 + $0x38] sm:$0xff]  ;;  %v262_v43 = vperm.slane %v1487_v19, 1  ;;  %v354_v1 = vperm.slane %v1487_v19, 2 }
  0x27   :  { %221 = vmatpush.bf16.msra.mxu0 %v1095_v4  ;;  %v1106_v39 = vld [vmem:[#allocation7] sm:$0xff]  ;;  %495 = vmatpush.bf16.msra.mxu3 %v1121_v40  ;;  %v1120_v41 = vld [vmem:[#allocation8 + $0x30] sm:$0xff]  ;;  %v1119_v42 = vld [vmem:[#allocation8 + $0x28] sm:$0xff] }
  0x28   :  { %313 = vmatpush.bf16.msra.mxu1 %v1103_v5  ;;  %404 = vmatpush.bf16.msra.mxu2 %v1112_v18  ;;  %v1118_v57 = vld [vmem:[#allocation8 + $0x20] sm:$0xff]  ;;  %v1117_v58 = vld [vmem:[#allocation8 + $0x18] sm:$0xff]  ;;  %v1116_v59 = vld [vmem:[#allocation8 + $0x10] sm:$0xff] }
  0x29   :  { %v1115_v60 = vld [vmem:[#allocation8 + $0x8] sm:$0xff]  ;;  %v1114_v61 = vld [vmem:[#allocation8] sm:$0xff]  ;;  %v1129_v62 = vld [vmem:[#allocation10 + $0x38] sm:$0xff] }
  0x2a   :  { %v1128_v63 = vld [vmem:[#allocation10 + $0x30] sm:$0xff]  ;;  %v1127_v0 = vld [vmem:[#allocation10 + $0x28] sm:$0xff] }
  0x2b   :  { %222 = vmatpush.bf16.msra.mxu0 %v1094_v6  ;;  %496 = vmatpush.bf16.msra.mxu3 %v1120_v41  ;;  %v1124_v17 = vld [vmem:[#allocation10 + $0x10] sm:$0xff]  ;;  %v1123_v18 = vld [vmem:[#allocation10 + $0x8] sm:$0xff] }
  0x2c   :  { %314 = vmatpush.bf16.msra.mxu1 %v1102_v12  ;;  %405 = vmatpush.bf16.msra.mxu2 %v1111_v20  ;;  %v1122_v20 = vld [vmem:[#allocation10] sm:$0xff]  ;;  %v1132_v40 = vld [vmem:[#allocation11 + $0x10] sm:$0xff]  ;;  %v1131_v41 = vld [vmem:[#allocation11 + $0x8] sm:$0xff] }
  0x2f   :  { %223 = vmatpush.bf16.msra.mxu0 %v1093_v7  ;;  %497 = vmatpush.bf16.msra.mxu3 %v1119_v42  ;;  %v1130_v42 = vld [vmem:[#allocation11] sm:$0xff] }
  0x30   :  { %315 = vmatpush.bf16.msra.mxu1 %v1101_v13  ;;  %406 = vmatpush.bf16.msra.mxu2 %v1110_v35 }
  0x33   :  { %224 = vmatpush.bf16.msra.mxu0 %v1092_v8  ;;  %498 = vmatpush.bf16.msra.mxu3 %v1118_v57 }
  0x34   :  { %316 = vmatpush.bf16.msra.mxu1 %v1100_v14  ;;  %407 = vmatpush.bf16.msra.mxu2 %v1109_v36 }
  0x37   :  { %225 = vmatpush.bf16.msra.mxu0 %v1091_v9  ;;  %499 = vmatpush.bf16.msra.mxu3 %v1117_v58 }
  0x38   :  { %317 = vmatpush.bf16.msra.mxu1 %v1099_v15  ;;  %408 = vmatpush.bf16.msra.mxu2 %v1108_v37  ;;  %v1126_v15 = vld [vmem:[#allocation10 + $0x20] sm:$0xff] }
  0x3b   :  { %226 = vmatpush.bf16.msra.mxu0 %v1090_v10  ;;  %500 = vmatpush.bf16.msra.mxu3 %v1116_v59 }
  0x3c   :  { %318 = vmatpush.bf16.msra.mxu1 %v1098_v16  ;;  %409 = vmatpush.bf16.msra.mxu2 %v1107_v38  ;;  %v1125_v16 = vld [vmem:[#allocation10 + $0x18] sm:$0xff]  ;;  %v1134_v38 = vld [vmem:[#allocation11 + $0x20] sm:$0xff] }
  0x3e   :  { %227 = vmatmul.bf16.vlgmr.msra.gmra.mxu0 %v1089_v11 }
  0x3f   :  { %501 = vmatpush.bf16.msra.mxu3 %v1115_v60  ;;  %587 = vmatpush.bf16.msrb.mxu0 %v1129_v62  ;;  %v1142_v60 = vld [vmem:[#allocation13 + $0x20] sm:$0xff]  ;;  %v1140_v62 = vld [vmem:[#allocation13 + $0x10] sm:$0xff] }
  0x40   :  { %410 = vmatpush.bf16.msra.mxu2 %v1106_v39  ;;  %v1133_v39 = vld [vmem:[#allocation11 + $0x18] sm:$0xff] }
  0x43   :  { %502 = vmatpush.bf16.msra.mxu3 %v1114_v61  ;;  %588 = vmatpush.bf16.msrb.mxu0 %v1128_v63  ;;  %v1141_v61 = vld [vmem:[#allocation13 + $0x18] sm:$0xff]  ;;  %v1139_v63 = vld [vmem:[#allocation13 + $0x8] sm:$0xff] }
  0x47   :  { %589 = vmatpush.bf16.msrb.mxu0 %v1127_v0  ;;  %v1138_v0 = vld [vmem:[#allocation13] sm:$0xff] }
  0x4b   :  { %590 = vmatpush.bf16.msrb.mxu0 %v1126_v15  ;;  %v785_v15 = vlaneseq }
  0x4f   :  { %591 = vmatpush.bf16.msrb.mxu0 %v1125_v16  ;;  %v786_v16 = vand.u32 127, %v785_v15 }
  0x51   :  { %vm787_vm0 = vcmp.lt.s32.totalorder %v786_v16, 4 }
  0x53   :  { %592 = vmatpush.bf16.msrb.mxu0 %v1124_v17  ;;  %v722_v17 = vperm.slane %v1487_v19, 6 }
  0x57   :  { %593 = vmatpush.bf16.msrb.mxu0 %v1123_v18 }
  0x5b   :  { %594 = vmatpush.bf16.msrb.mxu0 %v1122_v20 }
  0xbb   :  { %v228_v22 = vpop.f32.mrf.mxu0 }
  0xbc   :  { %v229_v23 = vadd.f32 %v228_v22, %v164_v21  ;;  %v1136_v22 = vld [vmem:[#allocation11 + $0x30] sm:$0xff] }
  0xbe   :  { %v233_v24 = vpack.c.bf16 %v229_v23, %v229_v23  ;;  %v1135_v23 = vld [vmem:[#allocation11 + $0x28] sm:$0xff] }
  0xc0   :  { %v235_v26 = vunpack.c.l.bf16 %v233_v24  ;;  %v446_v24 = vperm.slane %v1487_v19, 3 }
  0xc2   :  { %v237_v29 = vmul.f32 0.20019531, %v235_v26 }
  0xc3   :  { %v230_v25 = vpop.f32.mrf.mxu0 }
  0xc4   :  { %v231_v27 = vadd.f32 %v230_v25, %v164_v21  ;;  %v243_v32 = vmax.f32 %v235_v26, %v237_v29  ;;  %v1137_v21 = vld [vmem:[#allocation11 + $0x38] sm:$0xff] }
  0xc5   :  { %679 = vmatpush.bf16.msrb.mxu1 %v1137_v21 }
  0xc6   :  { %v234_v28 = vpack.c.bf16 %v231_v27, %v231_v27 }
  0xc8   :  { %v236_v30 = vunpack.c.l.bf16 %v234_v28 }
  0xc9   :  { %680 = vmatpush.bf16.msrb.mxu1 %v1136_v22 }
  0xca   :  { %v238_v31 = vmul.f32 0.20019531, %v236_v30 }
  0xcc   :  { %v244_v33 = vmax.f32 %v236_v30, %v238_v31 }
  0xcd   :  { %681 = vmatpush.bf16.msrb.mxu1 %v1135_v23 }
  0xce   :  { %v245_v34 = vpack.c.bf16 %v244_v33, %v243_v32 }
  0xd0   :  { %319 = vmatmul.bf16.vlgmr.msra.gmra.mxu1 %v245_v34 }
  0xd1   :  { %682 = vmatpush.bf16.msrb.mxu1 %v1134_v38 }
  0xd5   :  { %683 = vmatpush.bf16.msrb.mxu1 %v1133_v39 }
  0xd9   :  { %684 = vmatpush.bf16.msrb.mxu1 %v1132_v40 }
  0xdd   :  { %685 = vmatpush.bf16.msrb.mxu1 %v1131_v41 }
  0xe1   :  { %686 = vmatpush.bf16.msrb.mxu1 %v1130_v42 }
 0x14d   :  { %v320_v44 = vpop.f32.mrf.mxu1 }
 0x14e   :  { %v321_v45 = vadd.f32 %v320_v44, %v262_v43  ;;  %v1144_v44 = vld [vmem:[#allocation13 + $0x30] sm:$0xff] }
 0x150   :  { %v325_v46 = vpack.c.bf16 %v321_v45, %v321_v45  ;;  %v1143_v45 = vld [vmem:[#allocation13 + $0x28] sm:$0xff] }
 0x152   :  { %v327_v48 = vunpack.c.l.bf16 %v325_v46  ;;  %v538_v46 = vperm.slane %v1487_v19, 4 }
 0x154   :  { %v329_v51 = vmul.f32 0.20019531, %v327_v48 }
 0x155   :  { %v322_v47 = vpop.f32.mrf.mxu1 }
 0x156   :  { %v323_v49 = vadd.f32 %v322_v47, %v262_v43  ;;  %v335_v54 = vmax.f32 %v327_v48, %v329_v51  ;;  %v1145_v43 = vld [vmem:[#allocation13 + $0x38] sm:$0xff] }
 0x157   :  { %771 = vmatpush.bf16.msrb.mxu2 %v1145_v43 }
 0x158   :  { %v326_v50 = vpack.c.bf16 %v323_v49, %v323_v49 }
 0x15a   :  { %v328_v52 = vunpack.c.l.bf16 %v326_v50 }
 0x15b   :  { %772 = vmatpush.bf16.msrb.mxu2 %v1144_v44  ;;  %v1382_v44 = vmov 0.0  }
 0x15c   :  { %v330_v53 = vmul.f32 0.20019531, %v328_v52 }
 0x15e   :  { %v336_v55 = vmax.f32 %v328_v52, %v330_v53 }
 0x15f   :  { %773 = vmatpush.bf16.msrb.mxu2 %v1143_v45 }
 0x160   :  { %v337_v56 = vpack.c.bf16 %v336_v55, %v335_v54 }
 0x162   :  { %411 = vmatmul.bf16.vlgmr.msra.gmra.mxu2 %v337_v56 }
 0x163   :  { %774 = vmatpush.bf16.msrb.mxu2 %v1142_v60 }
 0x167   :  { %775 = vmatpush.bf16.msrb.mxu2 %v1141_v61 }
 0x16b   :  { %776 = vmatpush.bf16.msrb.mxu2 %v1140_v62 }
 0x16f   :  { %777 = vmatpush.bf16.msrb.mxu2 %v1139_v63 }
 0x173   :  { %778 = vmatpush.bf16.msrb.mxu2 %v1138_v0 }
 0x1e5   :  { %v412_v2 = vpop.f32.mrf.mxu2 }
 0x1e6   :  { %v413_v3 = vadd.f32 %v412_v2, %v354_v1 }
 0x1e8   :  { %v417_v4 = vpack.c.bf16 %v413_v3, %v413_v3 }
 0x1ea   :  { %v419_v6 = vunpack.c.l.bf16 %v417_v4 }
 0x1ec   :  { %v421_v9 = vmul.f32 0.20019531, %v419_v6 }
 0x1ed   :  { %v414_v5 = vpop.f32.mrf.mxu2 }
 0x1ee   :  { %v415_v7 = vadd.f32 %v414_v5, %v354_v1  ;;  %v427_v12 = vmax.f32 %v419_v6, %v421_v9  ;;  %v630_v1 = vperm.slane %v1487_v19, 5  ;;  %v811_v19 = vld [vmem:[%s1506_s1 + $0x8] sm:$0xff] }
 0x1f0   :  { %v418_v8 = vpack.c.bf16 %v415_v7, %v415_v7 }
 0x1f2   :  { %v420_v10 = vunpack.c.l.bf16 %v418_v8 }
 0x1f4   :  { %v422_v11 = vmul.f32 0.20019531, %v420_v10 }
 0x1f6   :  { %v428_v13 = vmax.f32 %v420_v10, %v422_v11 }
 0x1f8   :  { %v429_v14 = vpack.c.bf16 %v428_v13, %v427_v12 }
 0x1fa   :  { %503 = vmatmul.bf16.vlgmr.msra.gmra.mxu3 %v429_v14 }
 0x27d   :  { %v504_v25 = vpop.f32.mrf.mxu3 }
 0x27e   :  { %v505_v26 = vadd.f32 %v504_v25, %v446_v24  ;;  %v810_v25 = vld [vmem:[%s1506_s1] sm:$0xff]  ;;  %s1383_s1 = smov [#allocation14]  }
 0x27f   :  { %s844_s27 = sshll.u32 %s1383_s1, 4  ;;  %s845_s27 = int_to_ptr.vmem [resolvable:$true] %s844_s27 }
 0x280   :  { %v509_v27 = vpack.c.bf16 %v505_v26, %v505_v26  ;;  %v1381_v26 = vmov 0  }
 0x281   :  { %1160 = vset.pattern.permute.xlu2 %v1381_v26  ;;  %1161 = vset.pattern.permute.xlu0 %v1381_v26 }
 0x282   :  { %v511_v29 = vunpack.c.l.bf16 %v509_v27  ;;  %813 = vperm.xlu2 %1160, %v810_v25  }
 0x284   :  { %v513_v32 = vmul.f32 0.20019531, %v511_v29 }
 0x285   :  { %v506_v28 = vpop.f32.mrf.mxu3 }
 0x286   :  { %v507_v30 = vadd.f32 %v506_v28, %v446_v24  ;;  %v519_v35 = vmax.f32 %v511_v29, %v513_v32 }
 0x288   :  { %v510_v31 = vpack.c.bf16 %v507_v30, %v507_v30 }
 0x28a   :  { %v512_v33 = vunpack.c.l.bf16 %v510_v31  ;;  %816 = vperm.xlu2 %1160, %v811_v19  }
 0x28c   :  { %v514_v34 = vmul.f32 0.20019531, %v512_v33 }
 0x28e   :  { %v520_v36 = vmax.f32 %v512_v33, %v514_v34 }
 0x290   :  { %v521_v37 = vpack.c.bf16 %v520_v36, %v519_v35 }
 0x292   :  { %595 = vmatmul.bf16.vlgmr.msrb.gmra.mxu0 %v521_v37 }
 0x2dc   :  { %v814_v36 = vpop.permute.xlu2 %813 }
 0x2dd   :  { %vm818_vm1 = vcmp.eq.s32.totalorder %v786_v16, %v814_v36 }
 0x2de   :  { %v1087_v45 = vsel %vm818_vm1, 1.0, %v1382_v44 }
 0x2e4   :  { %v817_v40 = vpop.permute.xlu2 %816 }
 0x2e5   :  { %vm819_vm2 = vcmp.eq.s32.totalorder %v786_v16, %v817_v40 }
 0x30f   :  { %v596_v47 = vpop.f32.mrf.mxu0 }
 0x310   :  { %v597_v48 = vadd.f32 %v596_v47, %v538_v46  ;;  %v1088_v47 = vsel %vm819_vm2, 1.0, %v1382_v44 }
 0x312   :  { %v601_v49 = vpack.c.bf16 %v597_v48, %v597_v48 }
 0x314   :  { %v603_v51 = vunpack.c.l.bf16 %v601_v49 }
 0x316   :  { %v605_v54 = vmul.f32 0.20019531, %v603_v51 }
 0x317   :  { %v598_v50 = vpop.f32.mrf.mxu0 }
 0x318   :  { %v599_v52 = vadd.f32 %v598_v50, %v538_v46  ;;  %v611_v57 = vmax.f32 %v603_v51, %v605_v54 }
 0x31a   :  { %v602_v53 = vpack.c.bf16 %v599_v52, %v599_v52 }
 0x31c   :  { %v604_v55 = vunpack.c.l.bf16 %v602_v53 }
 0x31e   :  { %v606_v56 = vmul.f32 0.20019531, %v604_v55 }
 0x320   :  { %v612_v58 = vmax.f32 %v604_v55, %v606_v56 }
 0x322   :  { %v613_v59 = vpack.c.bf16 %v612_v58, %v611_v57 }
 0x324   :  { %687 = vmatmul.bf16.vlgmr.msrb.gmra.mxu1 %v613_v59 }
 0x3a1   :  { %v688_v2 = vpop.f32.mrf.mxu1 }
 0x3a2   :  { %v689_v3 = vadd.f32 %v688_v2, %v630_v1 }
 0x3a4   :  { %v693_v4 = vpack.c.bf16 %v689_v3, %v689_v3 }
 0x3a6   :  { %v695_v6 = vunpack.c.l.bf16 %v693_v4 }
 0x3a8   :  { %v697_v9 = vmul.f32 0.20019531, %v695_v6 }
 0x3a9   :  { %v690_v5 = vpop.f32.mrf.mxu1 }
 0x3aa   :  { %v691_v7 = vadd.f32 %v690_v5, %v630_v1  ;;  %v703_v12 = vmax.f32 %v695_v6, %v697_v9 }
 0x3ac   :  { %v694_v8 = vpack.c.bf16 %v691_v7, %v691_v7 }
 0x3ae   :  { %v696_v10 = vunpack.c.l.bf16 %v694_v8 }
 0x3b0   :  { %v698_v11 = vmul.f32 0.20019531, %v696_v10 }
 0x3b2   :  { %v704_v13 = vmax.f32 %v696_v10, %v698_v11 }
 0x3b4   :  { %v705_v14 = vpack.c.bf16 %v704_v13, %v703_v12 }
 0x3b6   :  { %779 = vmatmul.bf16.vlgmr.msrb.gmra.mxu2 %v705_v14 }
 0x439   :  { %v780_v18 = vpop.f32.mrf.mxu2 }
 0x43a   :  { %v781_v20 = vadd.f32 %v780_v18, %v722_v17 }
 0x43c   :  { %v788_v21 = vsel %vm787_vm0, %v781_v20, -1e+30 }
 0x43d   :  { %790 = vmax.xlane.f32.xlu0 %v788_v21 }
 0x441   :  { %v782_v22 = vpop.f32.mrf.mxu2 }
 0x442   :  { %v783_v23 = vadd.f32 %v782_v22, %v722_v17 }
 0x444   :  { %v789_v24 = vsel %vm787_vm0, %v783_v23, -1e+30 }
 0x445   :  { %792 = vmax.xlane.f32.xlu0 %v789_v24 }
 0x4b0   :  { %v791_v27 = vpop.xlane.xlu0 %790 }
 0x4b1   :  { %v794_v28 = vsub.f32 %v788_v21, %v791_v27 }
 0x4b3   :  { %v796_v29 = vmul.f32 1.442695, %v794_v28 }
 0x4b5   :  { %1162 = vpow2.f32 %v796_v29 }
 0x4b8   :  { %v793_v30 = vpop.xlane.xlu0 %792 }
 0x4b9   :  { %v795_v31 = vsub.f32 %v789_v24, %v793_v30 }
 0x4bb   :  { %v1163_v32 = vpop.eup %1162  ;;  %v798_v33 = vmul.f32 1.442695, %v795_v31 }
 0x4bc   :  { %800 = vadd.xlane.f32.xlu1 %v1163_v32 }
 0x4bd   :  { %1164 = vpow2.f32 %v798_v33 }
 0x4c3   :  { %v1165_v34 = vpop.eup %1164 }
 0x4c4   :  { %802 = vadd.xlane.f32.xlu1 %v1165_v34 }
 0x52f   :  { %v801_v35 = vpop.xlane.xlu1 %800 }
 0x530   :  { %1166 = vlog2.f32 %v801_v35 }
 0x536   :  { %v1167_v38 = vpop.eup %1166 }
 0x537   :  { %v803_v37 = vpop.xlane.xlu1 %802  ;;  %v805_v39 = vmul.f32 0.6931472, %v1167_v38 }
 0x538   :  { %1168 = vlog2.f32 %v803_v37 }
 0x539   :  { %v808_v42 = vsub.f32 %v794_v28, %v805_v39 }
 0x53b   :  { %v824_v48 = vmul.f32 %v1087_v45, %v808_v42 }
 0x53e   :  { %v1169_v41 = vpop.eup %1168 }
 0x53f   :  { %v807_v43 = vmul.f32 0.6931472, %v1169_v41 }
 0x541   :  { %v809_v46 = vsub.f32 %v795_v31, %v807_v43 }
 0x543   :  { %v825_v49 = vmul.f32 %v1088_v47, %v809_v46 }
 0x545   :  { %v826_v50 = vadd.f32 %v825_v49, %v824_v48 }
 0x547   :  { %827 = vadd.xlane.f32.xlu0 %v826_v50 }
 0x5ba   :  { %v828_v51 = vpop.xlane.xlu0 %827 }
 0x5bb   :  { %v829_v52 = vrot.slane %v828_v51, 4 }
 0x5bd   :  { %v830_v53 = vadd.f32 %v829_v52, %v828_v51 }
 0x5bf   :  { %v831_v54 = vrot.slane %v830_v53, 2 }
 0x5c1   :  { %v832_v55 = vadd.f32 %v831_v54, %v830_v53 }
 0x5c3   :  { %v833_v56 = vrot.slane %v832_v55, 1 }
 0x5c5   :  { %v834_v57 = vadd.f32 %v833_v56, %v832_v55 }
 0x5c7   :  { %1146 = vpush %v834_v57 }
 0x5f8   :  { %s1147_s11 = spop %1146 }
 0x5f9   :  { %s836_s7 = ssub.f32 0.0, %s1147_s11 }
 0x5fb   :  { %v837_v58 = vstv %s836_s7 }
 0x5fc   :  { %838 = vst [vmem:[#allocation14] sm:$0xff] %v837_v58 }
 0x5fd   :  { %849 = dma.vmem_to_hbm [thread:$0]  %s845_s27, 128, %s847_s30, [#allocation4]  }
 0x5fe   :  { %1370 = dma.done.wait [#allocation4], 128  }
 0x5ff   :  { %1371 = vsyncadd [#allocation4], 4294967168 }
 0x600   :  { %854 = vsyncpa [#allocation3], 1 }
 0x601   :  { %855 = vsyncpa [#allocation6], 1 }
 0x602   :  { %856 = vsyncpa [#allocation9], 1 }
 0x603   :  { %857 = vsyncpa [#allocation12], 1 }
 0x604   :  { %858 = vsyncpa [#allocation4], 1 }

// kernel: tpu_custom_call.1
= control target key start
LH: loop header
LB: loop body
LE: loop exit
PB: predicated region body
PF: predicated region fallthrough
CT: control target
= control target key end

     0   :  { %15 = vsyncpa [#allocation3], 0  ;;  %s1505_s0 = inlined_call_operand.vmem [shape: bf16[16,128], index: 0, kind: input, shape index: {}]   ;;  %s1506_s1 = inlined_call_operand.vmem [shape: s32[16,1], index: 1, kind: input, shape index: {}]   ;;  %s1507_s2 = inlined_call_operand.hbm [shape: bf16[128,128], index: 2, kind: input, shape index: {}]   ;;  %s1508_s3 = inlined_call_operand.hbm [shape: bf16[128,128], index: 3, kind: input, shape index: {}]   ;;  %s1509_s4 = inlined_call_operand.hbm [shape: bf16[128,128], index: 4, kind: input, shape index: {}]   ;;  %s1510_s5 = inlined_call_operand.hbm [shape: bf16[128,128], index: 5, kind: input, shape index: {}]   ;;  %s1511_s6 = inlined_call_operand.hbm [shape: bf16[128,128], index: 6, kind: input, shape index: {}]   ;;  %s1512_s7 = inlined_call_operand.hbm [shape: bf16[128,128], index: 7, kind: input, shape index: {}]   ;;  %s1513_s8 = inlined_call_operand.hbm [shape: bf16[128,128], index: 8, kind: input, shape index: {}]   ;;  %s1514_s9 = inlined_call_operand.vmem [shape: f32[8,128], index: 9, kind: input, shape index: {}]   ;;  %s1515_s10 = inlined_call_operand.hbm [shape: f32[1,8,128], index: 10, kind: output, shape index: {}]  }
   0x1   :  { %16 = vsyncpa [#allocation6], 0 }
   0x2   :  { %17 = vsyncpa [#allocation9], 0 }
   0x3   :  { %18 = vsyncpa [#allocation12], 0 }
   0x4   :  { %19 = vsyncpa [#allocation4], 0  ;;  %s41_s15 = sshll.u32 %s1508_s3, 4  ;;  %s1372_s16 = smov [#allocation5]   ;;  %s42_s15 = int_to_ptr.hbm [resolvable:$true] %s41_s15 }
   0x5   :  { %s43_s17 = sshll.u32 %s1372_s16, 4  ;;  %s67_s20 = sshll.u32 %s1510_s5, 4  ;;  %s44_s17 = int_to_ptr.vmem [resolvable:$true] %s43_s17  ;;  %s68_s20 = int_to_ptr.hbm [resolvable:$true] %s67_s20 }
   0x6   :  { %s1373_s21 = smov 64   ;;  %s1374_s22 = smov 4  }
   0x7   :  { %49 = dma.hbm_to_vmem [thread:$0]  %s42_s15, 1024, %s44_s17, [#allocation6], %s1373_s21, %s1373_s21, %s1374_s22  }
   0x8   :  { %s1375_s23 = smov [#allocation8]   ;;  %s93_s3 = sshll.u32 %s1512_s7, 4  ;;  %s94_s3 = int_to_ptr.hbm [resolvable:$true] %s93_s3 }
   0x9   :  { %s69_s24 = sshll.u32 %s1375_s23, 4  ;;  %s28_s28 = sshll.u32 %s1507_s2, 4  ;;  %s70_s24 = int_to_ptr.vmem [resolvable:$true] %s69_s24  ;;  %s29_s28 = int_to_ptr.hbm [resolvable:$true] %s28_s28 }
   0xa   :  { %75 = dma.hbm_to_vmem [thread:$0]  %s68_s20, 1024, %s70_s24, [#allocation9], %s1373_s21, %s1373_s21, %s1374_s22  }
   0xb   :  { %s1376_s29 = smov [#allocation11]   ;;  %s1377_s11 = smov [#allocation2]  }
   0xc   :  { %s95_s30 = sshll.u32 %s1376_s29, 4  ;;  %s30_s7 = sshll.u32 %s1377_s11, 4  ;;  %s96_s30 = int_to_ptr.vmem [resolvable:$true] %s95_s30  ;;  %s31_s7 = int_to_ptr.vmem [resolvable:$true] %s30_s7 }
   0xd   :  { %101 = dma.hbm_to_vmem [thread:$0]  %s94_s3, 1024, %s96_s30, [#allocation12], %s1373_s21, %s1373_s21, %s1374_s22  }
   0xe   :  { %s54_s14 = sshll.u32 %s1509_s4, 4  ;;  %s80_s16 = sshll.u32 %s1511_s6, 4  ;;  %s55_s14 = int_to_ptr.hbm [resolvable:$true] %s54_s14  ;;  %s81_s16 = int_to_ptr.hbm [resolvable:$true] %s80_s16 }
   0xf   :  { %36 = dma.hbm_to_vmem [thread:$0]  %s29_s28, 1024, %s31_s7, [#allocation3], %s1373_s21, %s1373_s21, %s1374_s22  }
  0x10   :  { %s1378_s17 = smov [#allocation7]   ;;  %s1379_s19 = smov [#allocation10]  }
  0x11   :  { %s56_s18 = sshll.u32 %s1378_s17, 4  ;;  %s82_s4 = sshll.u32 %s1379_s19, 4  ;;  %s57_s18 = int_to_ptr.vmem [resolvable:$true] %s56_s18  ;;  %s83_s4 = int_to_ptr.vmem [resolvable:$true] %s82_s4 }
  0x12   :  { %62 = dma.hbm_to_vmem [thread:$0]  %s55_s14, 1024, %s57_s18, [#allocation6], %s1373_s21, %s1373_s21, %s1374_s22  }
  0x13   :  { %s106_s24 = sshll.u32 %s1513_s8, 4  ;;  %s1380_s6 = smov [#allocation13]   ;;  %s107_s24 = int_to_ptr.hbm [resolvable:$true] %s106_s24 }
  0x14   :  { %88 = dma.hbm_to_vmem [thread:$0]  %s81_s16, 1024, %s83_s4, [#allocation9], %s1373_s21, %s1373_s21, %s1374_s22  }
  0x15   :  { %s108_s25 = sshll.u32 %s1380_s6, 4  ;;  %s109_s25 = int_to_ptr.vmem [resolvable:$true] %s108_s25 }
  0x16   :  { %114 = dma.hbm_to_vmem [thread:$0]  %s107_s24, 1024, %s109_s25, [#allocation12], %s1373_s21, %s1373_s21, %s1374_s22  }
  0x17   :  { %1362 = dma.done.wait [#allocation3], 1024  }
  0x18   :  { %1363 = vsyncadd [#allocation3], 4294966272 }
  0x19   :  { %1364 = dma.done.wait [#allocation6], 2048  }
  0x1a   :  { %1365 = vsyncadd [#allocation6], 4294965248 }
  0x1b   :  { %1366 = dma.done.wait [#allocation9], 2048  }
  0x1c   :  { %1367 = vsyncadd [#allocation9], 4294965248 }
  0x1d   :  { %1368 = dma.done.wait [#allocation12], 2048  }
  0x1e   :  { %1369 = vsyncadd [#allocation12], 4294965248  ;;  %v1097_v0 = vld [vmem:[#allocation2 + $0x38] sm:$0xff]  ;;  %v1096_v1 = vld [vmem:[#allocation2 + $0x30] sm:$0xff]  ;;  %s846_s30 = sshll.u32 %s1515_s10, 4  ;;  %s847_s30 = int_to_ptr.hbm [resolvable:$true] %s846_s30 }
  0x1f   :  { %219 = vmatpush.bf16.msra.mxu0 %v1097_v0  ;;  %v1105_v2 = vld [vmem:[#allocation5 + $0x38] sm:$0xff]  ;;  %v1104_v3 = vld [vmem:[#allocation5 + $0x30] sm:$0xff]  ;;  %v1095_v4 = vld [vmem:[#allocation2 + $0x28] sm:$0xff] }
  0x20   :  { %311 = vmatpush.bf16.msra.mxu1 %v1105_v2  ;;  %v1103_v5 = vld [vmem:[#allocation5 + $0x28] sm:$0xff]  ;;  %v1094_v6 = vld [vmem:[#allocation2 + $0x20] sm:$0xff]  ;;  %v1093_v7 = vld [vmem:[#allocation2 + $0x18] sm:$0xff] }
  0x21   :  { %v1092_v8 = vld [vmem:[#allocation2 + $0x10] sm:$0xff]  ;;  %v1091_v9 = vld [vmem:[#allocation2 + $0x8] sm:$0xff]  ;;  %v1090_v10 = vld [vmem:[#allocation2] sm:$0xff] }
  0x22   :  { %v1089_v11 = vld [vmem:[%s1505_s0] sm:$0xff]  ;;  %v1101_v13 = vld [vmem:[#allocation5 + $0x18] sm:$0xff]  ;;  %v1100_v14 = vld [vmem:[#allocation5 + $0x10] sm:$0xff] }
  0x23   :  { %220 = vmatpush.bf16.msra.mxu0 %v1096_v1  ;;  %v1102_v12 = vld [vmem:[#allocation5 + $0x20] sm:$0xff]  ;;  %v1099_v15 = vld [vmem:[#allocation5 + $0x8] sm:$0xff]  ;;  %v1113_v17 = vld [vmem:[#allocation7 + $0x38] sm:$0xff] }
  0x24   :  { %312 = vmatpush.bf16.msra.mxu1 %v1104_v3  ;;  %v1098_v16 = vld [vmem:[#allocation5] sm:$0xff]  ;;  %403 = vmatpush.bf16.msra.mxu2 %v1113_v17  ;;  %v1112_v18 = vld [vmem:[#allocation7 + $0x30] sm:$0xff]  ;;  %v1111_v20 = vld [vmem:[#allocation7 + $0x28] sm:$0xff] }
  0x25   :  { %v1487_v19 = vld [vmem:[%s1514_s9] sm:$0xff]  ;;  %v1109_v36 = vld [vmem:[#allocation7 + $0x18] sm:$0xff]  ;;  %v1108_v37 = vld [vmem:[#allocation7 + $0x10] sm:$0xff] }
  0x26   :  { %v164_v21 = vperm.slane %v1487_v19, 0  ;;  %v1110_v35 = vld [vmem:[#allocation7 + $0x20] sm:$0xff]  ;;  %v1107_v38 = vld [vmem:[#allocation7 + $0x8] sm:$0xff]  ;;  %v1121_v40 = vld [vmem:[#allocation8 + $0x38] sm:$0xff]  ;;  %v262_v43 = vperm.slane %v1487_v19, 1  ;;  %v354_v1 = vperm.slane %v1487_v19, 2 }
  0x27   :  { %221 = vmatpush.bf16.msra.mxu0 %v1095_v4  ;;  %v1106_v39 = vld [vmem:[#allocation7] sm:$0xff]  ;;  %495 = vmatpush.bf16.msra.mxu3 %v1121_v40  ;;  %v1120_v41 = vld [vmem:[#allocation8 + $0x30] sm:$0xff]  ;;  %v1119_v42 = vld [vmem:[#allocation8 + $0x28] sm:$0xff] }
  0x28   :  { %313 = vmatpush.bf16.msra.mxu1 %v1103_v5  ;;  %404 = vmatpush.bf16.msra.mxu2 %v1112_v18  ;;  %v1118_v57 = vld [vmem:[#allocation8 + $0x20] sm:$0xff]  ;;  %v1117_v58 = vld [vmem:[#allocation8 + $0x18] sm:$0xff]  ;;  %v1116_v59 = vld [vmem:[#allocation8 + $0x10] sm:$0xff] }
  0x29   :  { %v1115_v60 = vld [vmem:[#allocation8 + $0x8] sm:$0xff]  ;;  %v1114_v61 = vld [vmem:[#allocation8] sm:$0xff]  ;;  %v1129_v62 = vld [vmem:[#allocation10 + $0x38] sm:$0xff] }
  0x2a   :  { %v1128_v63 = vld [vmem:[#allocation10 + $0x30] sm:$0xff]  ;;  %v1127_v0 = vld [vmem:[#allocation10 + $0x28] sm:$0xff] }
  0x2b   :  { %222 = vmatpush.bf16.msra.mxu0 %v1094_v6  ;;  %496 = vmatpush.bf16.msra.mxu3 %v1120_v41  ;;  %v1124_v17 = vld [vmem:[#allocation10 + $0x10] sm:$0xff]  ;;  %v1123_v18 = vld [vmem:[#allocation10 + $0x8] sm:$0xff] }
  0x2c   :  { %314 = vmatpush.bf16.msra.mxu1 %v1102_v12  ;;  %405 = vmatpush.bf16.msra.mxu2 %v1111_v20  ;;  %v1122_v20 = vld [vmem:[#allocation10] sm:$0xff]  ;;  %v1132_v40 = vld [vmem:[#allocation11 + $0x10] sm:$0xff]  ;;  %v1131_v41 = vld [vmem:[#allocation11 + $0x8] sm:$0xff] }
  0x2f   :  { %223 = vmatpush.bf16.msra.mxu0 %v1093_v7  ;;  %497 = vmatpush.bf16.msra.mxu3 %v1119_v42  ;;  %v1130_v42 = vld [vmem:[#allocation11] sm:$0xff] }
  0x30   :  { %315 = vmatpush.bf16.msra.mxu1 %v1101_v13  ;;  %406 = vmatpush.bf16.msra.mxu2 %v1110_v35 }
  0x33   :  { %224 = vmatpush.bf16.msra.mxu0 %v1092_v8  ;;  %498 = vmatpush.bf16.msra.mxu3 %v1118_v57 }
  0x34   :  { %316 = vmatpush.bf16.msra.mxu1 %v1100_v14  ;;  %407 = vmatpush.bf16.msra.mxu2 %v1109_v36 }
  0x37   :  { %225 = vmatpush.bf16.msra.mxu0 %v1091_v9  ;;  %499 = vmatpush.bf16.msra.mxu3 %v1117_v58 }
  0x38   :  { %317 = vmatpush.bf16.msra.mxu1 %v1099_v15  ;;  %408 = vmatpush.bf16.msra.mxu2 %v1108_v37  ;;  %v1126_v15 = vld [vmem:[#allocation10 + $0x20] sm:$0xff] }
  0x3b   :  { %226 = vmatpush.bf16.msra.mxu0 %v1090_v10  ;;  %500 = vmatpush.bf16.msra.mxu3 %v1116_v59 }
  0x3c   :  { %318 = vmatpush.bf16.msra.mxu1 %v1098_v16  ;;  %409 = vmatpush.bf16.msra.mxu2 %v1107_v38  ;;  %v1125_v16 = vld [vmem:[#allocation10 + $0x18] sm:$0xff]  ;;  %v1134_v38 = vld [vmem:[#allocation11 + $0x20] sm:$0xff] }
  0x3e   :  { %227 = vmatmul.bf16.vlgmr.msra.gmra.mxu0 %v1089_v11 }
  0x3f   :  { %501 = vmatpush.bf16.msra.mxu3 %v1115_v60  ;;  %587 = vmatpush.bf16.msrb.mxu0 %v1129_v62  ;;  %v1142_v60 = vld [vmem:[#allocation13 + $0x20] sm:$0xff]  ;;  %v1140_v62 = vld [vmem:[#allocation13 + $0x10] sm:$0xff] }
  0x40   :  { %410 = vmatpush.bf16.msra.mxu2 %v1106_v39  ;;  %v1133_v39 = vld [vmem:[#allocation11 + $0x18] sm:$0xff] }
  0x43   :  { %502 = vmatpush.bf16.msra.mxu3 %v1114_v61  ;;  %588 = vmatpush.bf16.msrb.mxu0 %v1128_v63  ;;  %v1141_v61 = vld [vmem:[#allocation13 + $0x18] sm:$0xff]  ;;  %v1139_v63 = vld [vmem:[#allocation13 + $0x8] sm:$0xff] }
  0x47   :  { %589 = vmatpush.bf16.msrb.mxu0 %v1127_v0  ;;  %v1138_v0 = vld [vmem:[#allocation13] sm:$0xff] }
  0x4b   :  { %590 = vmatpush.bf16.msrb.mxu0 %v1126_v15  ;;  %v785_v15 = vlaneseq }
  0x4f   :  { %591 = vmatpush.bf16.msrb.mxu0 %v1125_v16  ;;  %v786_v16 = vand.u32 127, %v785_v15 }
  0x51   :  { %vm787_vm0 = vcmp.lt.s32.totalorder %v786_v16, 4 }
  0x53   :  { %592 = vmatpush.bf16.msrb.mxu0 %v1124_v17  ;;  %v722_v17 = vperm.slane %v1487_v19, 6 }
  0x57   :  { %593 = vmatpush.bf16.msrb.mxu0 %v1123_v18 }
  0x5b   :  { %594 = vmatpush.bf16.msrb.mxu0 %v1122_v20 }
  0xbb   :  { %v228_v22 = vpop.f32.mrf.mxu0 }
  0xbc   :  { %v229_v23 = vadd.f32 %v228_v22, %v164_v21  ;;  %v1136_v22 = vld [vmem:[#allocation11 + $0x30] sm:$0xff] }
  0xbe   :  { %v233_v24 = vpack.c.bf16 %v229_v23, %v229_v23  ;;  %v1135_v23 = vld [vmem:[#allocation11 + $0x28] sm:$0xff] }
  0xc0   :  { %v235_v26 = vunpack.c.l.bf16 %v233_v24  ;;  %v446_v24 = vperm.slane %v1487_v19, 3 }
  0xc2   :  { %v237_v29 = vmul.f32 0.20019531, %v235_v26 }
  0xc3   :  { %v230_v25 = vpop.f32.mrf.mxu0 }
  0xc4   :  { %v231_v27 = vadd.f32 %v230_v25, %v164_v21  ;;  %v243_v32 = vmax.f32 %v235_v26, %v237_v29  ;;  %v1137_v21 = vld [vmem:[#allocation11 + $0x38] sm:$0xff] }
  0xc5   :  { %679 = vmatpush.bf16.msrb.mxu1 %v1137_v21 }
  0xc6   :  { %v234_v28 = vpack.c.bf16 %v231_v27, %v231_v27 }
  0xc8   :  { %v236_v30 = vunpack.c.l.bf16 %v234_v28 }
  0xc9   :  { %680 = vmatpush.bf16.msrb.mxu1 %v1136_v22 }
  0xca   :  { %v238_v31 = vmul.f32 0.20019531, %v236_v30 }
  0xcc   :  { %v244_v33 = vmax.f32 %v236_v30, %v238_v31 }
  0xcd   :  { %681 = vmatpush.bf16.msrb.mxu1 %v1135_v23 }
  0xce   :  { %v245_v34 = vpack.c.bf16 %v244_v33, %v243_v32 }
  0xd0   :  { %319 = vmatmul.bf16.vlgmr.msra.gmra.mxu1 %v245_v34 }
  0xd1   :  { %682 = vmatpush.bf16.msrb.mxu1 %v1134_v38 }
  0xd5   :  { %683 = vmatpush.bf16.msrb.mxu1 %v1133_v39 }
  0xd9   :  { %684 = vmatpush.bf16.msrb.mxu1 %v1132_v40 }
  0xdd   :  { %685 = vmatpush.bf16.msrb.mxu1 %v1131_v41 }
  0xe1   :  { %686 = vmatpush.bf16.msrb.mxu1 %v1130_v42 }
 0x14d   :  { %v320_v44 = vpop.f32.mrf.mxu1 }
 0x14e   :  { %v321_v45 = vadd.f32 %v320_v44, %v262_v43  ;;  %v1144_v44 = vld [vmem:[#allocation13 + $0x30] sm:$0xff] }
 0x150   :  { %v325_v46 = vpack.c.bf16 %v321_v45, %v321_v45  ;;  %v1143_v45 = vld [vmem:[#allocation13 + $0x28] sm:$0xff] }
 0x152   :  { %v327_v48 = vunpack.c.l.bf16 %v325_v46  ;;  %v538_v46 = vperm.slane %v1487_v19, 4 }
 0x154   :  { %v329_v51 = vmul.f32 0.20019531, %v327_v48 }
 0x155   :  { %v322_v47 = vpop.f32.mrf.mxu1 }
 0x156   :  { %v323_v49 = vadd.f32 %v322_v47, %v262_v43  ;;  %v335_v54 = vmax.f32 %v327_v48, %v329_v51  ;;  %v1145_v43 = vld [vmem:[#allocation13 + $0x38] sm:$0xff] }
 0x157   :  { %771 = vmatpush.bf16.msrb.mxu2 %v1145_v43 }
 0x158   :  { %v326_v50 = vpack.c.bf16 %v323_v49, %v323_v49 }
 0x15a   :  { %v328_v52 = vunpack.c.l.bf16 %v326_v50 }
 0x15b   :  { %772 = vmatpush.bf16.msrb.mxu2 %v1144_v44  ;;  %v1382_v44 = vmov 0.0  }
 0x15c   :  { %v330_v53 = vmul.f32 0.20019531, %v328_v52 }
 0x15e   :  { %v336_v55 = vmax.f32 %v328_v52, %v330_v53 }
 0x15f   :  { %773 = vmatpush.bf16.msrb.mxu2 %v1143_v45 }
 0x160   :  { %v337_v56 = vpack.c.bf16 %v336_v55, %v335_v54 }
 0x162   :  { %411 = vmatmul.bf16.vlgmr.msra.gmra.mxu2 %v337_v56 }
 0x163   :  { %774 = vmatpush.bf16.msrb.mxu2 %v1142_v60 }
 0x167   :  { %775 = vmatpush.bf16.msrb.mxu2 %v1141_v61 }
 0x16b   :  { %776 = vmatpush.bf16.msrb.mxu2 %v1140_v62 }
 0x16f   :  { %777 = vmatpush.bf16.msrb.mxu2 %v1139_v63 }
 0x173   :  { %778 = vmatpush.bf16.msrb.mxu2 %v1138_v0 }
 0x1e5   :  { %v412_v2 = vpop.f32.mrf.mxu2 }
 0x1e6   :  { %v413_v3 = vadd.f32 %v412_v2, %v354_v1 }
 0x1e8   :  { %v417_v4 = vpack.c.bf16 %v413_v3, %v413_v3 }
 0x1ea   :  { %v419_v6 = vunpack.c.l.bf16 %v417_v4 }
 0x1ec   :  { %v421_v9 = vmul.f32 0.20019531, %v419_v6 }
 0x1ed   :  { %v414_v5 = vpop.f32.mrf.mxu2 }
 0x1ee   :  { %v415_v7 = vadd.f32 %v414_v5, %v354_v1  ;;  %v427_v12 = vmax.f32 %v419_v6, %v421_v9  ;;  %v630_v1 = vperm.slane %v1487_v19, 5  ;;  %v811_v19 = vld [vmem:[%s1506_s1 + $0x8] sm:$0xff] }
 0x1f0   :  { %v418_v8 = vpack.c.bf16 %v415_v7, %v415_v7 }
 0x1f2   :  { %v420_v10 = vunpack.c.l.bf16 %v418_v8 }
 0x1f4   :  { %v422_v11 = vmul.f32 0.20019531, %v420_v10 }
 0x1f6   :  { %v428_v13 = vmax.f32 %v420_v10, %v422_v11 }
 0x1f8   :  { %v429_v14 = vpack.c.bf16 %v428_v13, %v427_v12 }
 0x1fa   :  { %503 = vmatmul.bf16.vlgmr.msra.gmra.mxu3 %v429_v14 }
 0x27d   :  { %v504_v25 = vpop.f32.mrf.mxu3 }
 0x27e   :  { %v505_v26 = vadd.f32 %v504_v25, %v446_v24  ;;  %v810_v25 = vld [vmem:[%s1506_s1] sm:$0xff]  ;;  %s1383_s1 = smov [#allocation14]  }
 0x27f   :  { %s844_s27 = sshll.u32 %s1383_s1, 4  ;;  %s845_s27 = int_to_ptr.vmem [resolvable:$true] %s844_s27 }
 0x280   :  { %v509_v27 = vpack.c.bf16 %v505_v26, %v505_v26  ;;  %v1381_v26 = vmov 0  }
 0x281   :  { %1160 = vset.pattern.permute.xlu2 %v1381_v26  ;;  %1161 = vset.pattern.permute.xlu0 %v1381_v26 }
 0x282   :  { %v511_v29 = vunpack.c.l.bf16 %v509_v27  ;;  %813 = vperm.xlu2 %1160, %v810_v25  }
 0x284   :  { %v513_v32 = vmul.f32 0.20019531, %v511_v29 }
 0x285   :  { %v506_v28 = vpop.f32.mrf.mxu3 }
 0x286   :  { %v507_v30 = vadd.f32 %v506_v28, %v446_v24  ;;  %v519_v35 = vmax.f32 %v511_v29, %v513_v32 }
 0x288   :  { %v510_v31 = vpack.c.bf16 %v507_v30, %v507_v30 }
 0x28a   :  { %v512_v33 = vunpack.c.l.bf16 %v510_v31  ;;  %816 = vperm.xlu2 %1160, %v811_v19  }
 0x28c   :  { %v514_v34 = vmul.f32 0.20019531, %v512_v33 }
 0x28e   :  { %v520_v36 = vmax.f32 %v512_v33, %v514_v34 }
 0x290   :  { %v521_v37 = vpack.c.bf16 %v520_v36, %v519_v35 }
 0x292   :  { %595 = vmatmul.bf16.vlgmr.msrb.gmra.mxu0 %v521_v37 }
 0x2dc   :  { %v814_v36 = vpop.permute.xlu2 %813 }
 0x2dd   :  { %vm818_vm1 = vcmp.eq.s32.totalorder %v786_v16, %v814_v36 }
 0x2de   :  { %v1087_v45 = vsel %vm818_vm1, 1.0, %v1382_v44 }
 0x2e4   :  { %v817_v40 = vpop.permute.xlu2 %816 }
 0x2e5   :  { %vm819_vm2 = vcmp.eq.s32.totalorder %v786_v16, %v817_v40 }
 0x30f   :  { %v596_v47 = vpop.f32.mrf.mxu0 }
 0x310   :  { %v597_v48 = vadd.f32 %v596_v47, %v538_v46  ;;  %v1088_v47 = vsel %vm819_vm2, 1.0, %v1382_v44 }
 0x312   :  { %v601_v49 = vpack.c.bf16 %v597_v48, %v597_v48 }
 0x314   :  { %v603_v51 = vunpack.c.l.bf16 %v601_v49 }
 0x316   :  { %v605_v54 = vmul.f32 0.20019531, %v603_v51 }
 0x317   :  { %v598_v50 = vpop.f32.mrf.mxu0 }
 0x318   :  { %v599_v52 = vadd.f32 %v598_v50, %v538_v46  ;;  %v611_v57 = vmax.f32 %v603_v51, %v605_v54 }
 0x31a   :  { %v602_v53 = vpack.c.bf16 %v599_v52, %v599_v52 }
 0x31c   :  { %v604_v55 = vunpack.c.l.bf16 %v602_v53 }
 0x31e   :  { %v606_v56 = vmul.f32 0.20019531, %v604_v55 }
 0x320   :  { %v612_v58 = vmax.f32 %v604_v55, %v606_v56 }
 0x322   :  { %v613_v59 = vpack.c.bf16 %v612_v58, %v611_v57 }
 0x324   :  { %687 = vmatmul.bf16.vlgmr.msrb.gmra.mxu1 %v613_v59 }
 0x3a1   :  { %v688_v2 = vpop.f32.mrf.mxu1 }
 0x3a2   :  { %v689_v3 = vadd.f32 %v688_v2, %v630_v1 }
 0x3a4   :  { %v693_v4 = vpack.c.bf16 %v689_v3, %v689_v3 }
 0x3a6   :  { %v695_v6 = vunpack.c.l.bf16 %v693_v4 }
 0x3a8   :  { %v697_v9 = vmul.f32 0.20019531, %v695_v6 }
 0x3a9   :  { %v690_v5 = vpop.f32.mrf.mxu1 }
 0x3aa   :  { %v691_v7 = vadd.f32 %v690_v5, %v630_v1  ;;  %v703_v12 = vmax.f32 %v695_v6, %v697_v9 }
 0x3ac   :  { %v694_v8 = vpack.c.bf16 %v691_v7, %v691_v7 }
 0x3ae   :  { %v696_v10 = vunpack.c.l.bf16 %v694_v8 }
 0x3b0   :  { %v698_v11 = vmul.f32 0.20019531, %v696_v10 }
 0x3b2   :  { %v704_v13 = vmax.f32 %v696_v10, %v698_v11 }
 0x3b4   :  { %v705_v14 = vpack.c.bf16 %v704_v13, %v703_v12 }
 0x3b6   :  { %779 = vmatmul.bf16.vlgmr.msrb.gmra.mxu2 %v705_v14 }
 0x439   :  { %v780_v18 = vpop.f32.mrf.mxu2 }
 0x43a   :  { %v781_v20 = vadd.f32 %v780_v18, %v722_v17 }
 0x43c   :  { %v788_v21 = vsel %vm787_vm0, %v781_v20, -1e+30 }
 0x43d   :  { %790 = vmax.xlane.f32.xlu0 %v788_v21 }
 0x441   :  { %v782_v22 = vpop.f32.mrf.mxu2 }
 0x442   :  { %v783_v23 = vadd.f32 %v782_v22, %v722_v17 }
 0x444   :  { %v789_v24 = vsel %vm787_vm0, %v783_v23, -1e+30 }
 0x445   :  { %792 = vmax.xlane.f32.xlu0 %v789_v24 }
 0x4b0   :  { %v791_v27 = vpop.xlane.xlu0 %790 }
 0x4b1   :  { %v794_v28 = vsub.f32 %v788_v21, %v791_v27 }
 0x4b3   :  { %v796_v29 = vmul.f32 1.442695, %v794_v28 }
 0x4b5   :  { %1162 = vpow2.f32 %v796_v29 }
 0x4b8   :  { %v793_v30 = vpop.xlane.xlu0 %792 }
 0x4b9   :  { %v795_v31 = vsub.f32 %v789_v24, %v793_v30 }
 0x4bb   :  { %v1163_v32 = vpop.eup %1162  ;;  %v798_v33 = vmul.f32 1.442695, %v795_v31 }
 0x4bc   :  { %800 = vadd.xlane.f32.xlu1 %v1163_v32 }
 0x4bd   :  { %1164 = vpow2.f32 %v798_v33 }
 0x4c3   :  { %v1165_v34 = vpop.eup %1164 }
 0x4c4   :  { %802 = vadd.xlane.f32.xlu1 %v1165_v34 }
 0x52f   :  { %v801_v35 = vpop.xlane.xlu1 %800 }
 0x530   :  { %1166 = vlog2.f32 %v801_v35 }
 0x536   :  { %v1167_v38 = vpop.eup %1166 }
 0x537   :  { %v803_v37 = vpop.xlane.xlu1 %802  ;;  %v805_v39 = vmul.f32 0.6931472, %v1167_v38 }
 0x538   :  { %1168 = vlog2.f32 %v803_v37 }
 0x539   :  { %v808_v42 = vsub.f32 %v794_v28, %v805_v39 }
 0x53b   :  { %v824_v48 = vmul.f32 %v1087_v45, %v808_v42 }
 0x53e   :  { %v1169_v41 = vpop.eup %1168 }
 0x53f   :  { %v807_v43 = vmul.f32 0.6931472, %v1169_v41 }
 0x541   :  { %v809_v46 = vsub.f32 %v795_v31, %v807_v43 }
 0x543   :  { %v825_v49 = vmul.f32 %v1088_v47, %v809_v46 }
 0x545   :  { %v826_v50 = vadd.f32 %v825_v49, %v824_v48 }
 0x547   :  { %827 = vadd.xlane.f32.xlu0 %v826_v50 }
 0x5ba   :  { %v828_v51 = vpop.xlane.xlu0 %827 }
 0x5bb   :  { %v829_v52 = vrot.slane %v828_v51, 4 }
 0x5bd   :  { %v830_v53 = vadd.f32 %v829_v52, %v828_v51 }
 0x5bf   :  { %v831_v54 = vrot.slane %v830_v53, 2 }
 0x5c1   :  { %v832_v55 = vadd.f32 %v831_v54, %v830_v53 }
 0x5c3   :  { %v833_v56 = vrot.slane %v832_v55, 1 }
 0x5c5   :  { %v834_v57 = vadd.f32 %v833_v56, %v832_v55 }
 0x5c7   :  { %1146 = vpush %v834_v57 }
 0x5f8   :  { %s1147_s11 = spop %1146 }
 0x5f9   :  { %s836_s7 = ssub.f32 0.0, %s1147_s11 }
 0x5fb   :  { %v837_v58 = vstv %s836_s7 }
 0x5fc   :  { %838 = vst [vmem:[#allocation14] sm:$0xff] %v837_v58 }
 0x5fd   :  { %849 = dma.vmem_to_hbm [thread:$0]  %s845_s27, 128, %s847_s30, [#allocation4]  }
 0x5fe   :  { %1370 = dma.done.wait [#allocation4], 128  }
 0x5ff   :  { %1371 = vsyncadd [#allocation4], 4294967168 }
 0x600   :  { %854 = vsyncpa [#allocation3], 1 }
 0x601   :  { %855 = vsyncpa [#allocation6], 1 }
 0x602   :  { %856 = vsyncpa [#allocation9], 1 }
 0x603   :  { %857 = vsyncpa [#allocation12], 1 }
 0x604   :  { %858 = vsyncpa [#allocation4], 1 }

</bundles_post_ra>
